<compile_context>
chip_gen: v5e
topology: v5e:2x2
jax: 0.10.0
libtpu: 0.0.40
codegen_flags: <defaults>
</compile_context>

<pallas_src>
import functools

import jax
import jax.numpy as jnp
from jax import lax
from jax.experimental import pallas as pl
from jax.experimental.pallas import tpu as pltpu


LANE = 128


def _round_up(x, m):
    return (x + m - 1) // m * m


def _pad_axis(a, axis, target):
    pad = target - a.shape[axis]
    if pad == 0:
        return a
    cfg = [(0, 0)] * a.ndim
    cfg[axis] = (0, pad)
    return jnp.pad(a, cfg)


def _compiler_params():
    return pltpu.CompilerParams(
        dimension_semantics=("parallel",),
        vmem_limit_bytes=32 * 1024 * 1024,
    )


# ---------------------------------------------------------------------------
# in-kernel helpers
# ---------------------------------------------------------------------------
def _conv1_to_scratch(x_ref, w1_ref, b1_ref, s_ref, *, stride, ho, wo, cin):
    """conv1 (3x3, stride 1|2) + folded BN1 + ReLU -> spatially padded VMEM scratch.

    stride == 1: x_ref block is (1, H+2, W+2, Cin)  (zero-padded image).
    stride == 2: x_ref block is (4, Hh, Wh, Cin)    (phase-decomposed padded image,
                 phase index p = 2*(row % 2) + (col % 2)).
    w1_ref: (9, Cin, Cp) bf16 (BN scale folded in), b1_ref: (1, Cp) f32.
    """
    if stride == 1:
        xv = x_ref[0]
        taps = [xv[dy:dy + ho, dx:dx + wo, :]
                for dy in range(3) for dx in range(3)]
    else:  # stride == 2
        phases = [x_ref[p] for p in range(4)]
        taps = []
        for dy in range(3):
            for dx in range(3):
                ph = phases[(dy % 2) * 2 + (dx % 2)]
                taps.append(ph[dy // 2:dy // 2 + ho, dx // 2:dx // 2 + wo, :])

    acc = None
    for t, tap in enumerate(taps):
        lhs = tap.reshape(ho * wo, cin).astype(jnp.bfloat16)
        part = jnp.dot(lhs, w1_ref[t], preferred_element_type=jnp.float32)
        acc = part if acc is None else acc + part

    out1 = jnp.maximum(acc + b1_ref[...], 0.0)
    # TODO(synk): training-mode dropout (pltpu.prng_* Bernoulli mask) would go here.
    s_ref[...] = jnp.zeros_like(s_ref)                       # zero the halo ring
    s_ref[1:ho + 1, 1:wo + 1, :] = out1.reshape(ho, wo, -1).astype(s_ref.dtype)


def _conv2_from_scratch(s_ref, w2_ref, b2_ref, *, ho, wo):
    """conv2 (3x3 stride 1) + folded BN2 on the padded conv1 output in VMEM."""
    acc = None
    t = 0
    for dy in range(3):
        for dx in range(3):
            tap = s_ref[dy:dy + ho, dx:dx + wo, :]           # (ho, wo, Cp), K-dim padded
            lhs = tap.reshape(ho * wo, tap.shape[-1]).astype(jnp.bfloat16)
            part = jnp.dot(lhs, w2_ref[t], preferred_element_type=jnp.float32)
            acc = part if acc is None else acc + part
            t += 1
    return acc + b2_ref[...]


# ---------------------------------------------------------------------------
# fused kernels (one pallas_call per residual block)
# ---------------------------------------------------------------------------
def _block_identity_kernel(x_ref, w1_ref, b1_ref, w2_ref, b2_ref, r_ref,
                           o_ref, s_ref, *, stride, ho, wo, cin):
    _conv1_to_scratch(x_ref, w1_ref, b1_ref, s_ref,
                      stride=stride, ho=ho, wo=wo, cin=cin)
    conv = _conv2_from_scratch(s_ref, w2_ref, b2_ref, ho=ho, wo=wo)
    out = jnp.maximum(conv + r_ref[0].astype(jnp.float32), 0.0)
    o_ref[0] = out.astype(o_ref.dtype)


def _block_downsample_kernel(x_ref, w1_ref, b1_ref, w2_ref, b2_ref,
                             xs_ref, wd_ref, bd_ref,
                             o_ref, s_ref, *, stride, ho, wo, cin):
    _conv1_to_scratch(x_ref, w1_ref, b1_ref, s_ref,
                      stride=stride, ho=ho, wo=wo, cin=cin)
    conv = _conv2_from_scratch(s_ref, w2_ref, b2_ref, ho=ho, wo=wo)
    # fused 1x1 downsample conv + folded BN on the residual path (no HBM round trip)
    res = jnp.dot(xs_ref[0], wd_ref[...],
                  preferred_element_type=jnp.float32) + bd_ref[...]
    out = jnp.maximum(conv + res, 0.0)
    o_ref[0] = out.astype(o_ref.dtype)


# ---------------------------------------------------------------------------
# plain-JAX glue: BN folding, padding, layout shuffles
# ---------------------------------------------------------------------------
def _fold_bn(gamma, beta, mean, var, conv_bias, eps=1e-5):
    scale = gamma / jnp.sqrt(var + eps)
    bias = scale * (conv_bias - mean) + beta
    return scale, bias


def residual_block_forward(x_nchw, params, stride):
    """Forward pass of ResidualBlock. x_nchw: [N, Cin, H, W] float32."""
    x = jnp.transpose(x_nchw, (0, 2, 3, 1)).astype(jnp.float32)    # NHWC
    n, h, w, cin = x.shape
    cout = params["w1"].shape[-1]
    cp = _round_up(cout, LANE)                                     # lane-dense Cout

    ho = (h + 2 - 3) // stride + 1
    wo = (w + 2 - 3) // stride + 1

    s1, b1 = _fold_bn(params["bn1_g"], params["bn1_b"], params["bn1_m"],
                      params["bn1_v"], params["b1"])
    s2, b2 = _fold_bn(params["bn2_g"], params["bn2_b"], params["bn2_m"],
                      params["bn2_v"], params["b2"])

    # BN scale folded into weights; output channels zero-padded to Cp; conv2's input
    # (K) dim padded to Cp too so the kernel never has to lane-slice; bf16 for the MXU.
    w1m = _pad_axis((params["w1"] * s1).reshape(9, cin, cout), 2, cp).astype(jnp.bfloat16)
    w2r = (params["w2"] * s2).reshape(9, cout, cout)
    w2m = _pad_axis(_pad_axis(w2r, 2, cp), 1, cp).astype(jnp.bfloat16)
    b1p = _pad_axis(b1.reshape(1, cout), 1, cp).astype(jnp.float32)
    b2p = _pad_axis(b2.reshape(1, cout), 1, cp).astype(jnp.float32)

    # ---- input layout for conv1 ------------------------------------------------
    xp = jnp.pad(x, ((0, 0), (1, 1), (1, 1), (0, 0)))              # [N, H+2, W+2, Cin]
    if stride == 1:
        x_in = xp
        x_spec = pl.BlockSpec((1, h + 2, w + 2, cin), lambda i: (i, 0, 0, 0))
    elif stride == 2:
        assert h % 2 == 0 and w % 2 == 0, "stride-2 path assumes even H, W"
        hh, wh = (h + 2) // 2, (w + 2) // 2
        # Phase decomposition (pure relayout, no duplication):
        #   x_in[n*4 + 2*py + px, yy, xx, c] == xp[n, 2*yy + py, 2*xx + px, c]
        x_in = (xp.reshape(n, hh, 2, wh, 2, cin)
                  .transpose(0, 2, 4, 1, 3, 5)
                  .reshape(n * 4, hh, wh, cin))
        x_spec = pl.BlockSpec((4, hh, wh, cin), lambda i: (i, 0, 0, 0))
    else:
        raise NotImplementedError("only stride 1 or 2 is supported")

    common_in_specs = [
        x_spec,
        pl.BlockSpec((9, cin, cp), lambda i: (0, 0, 0)),
        pl.BlockSpec((1, cp), lambda i: (0, 0)),
        pl.BlockSpec((9, cp, cp), lambda i: (0, 0, 0)),
        pl.BlockSpec((1, cp), lambda i: (0, 0)),
    ]
    out_spec = pl.BlockSpec((1, ho * wo, cp), lambda i: (i, 0, 0))
    out_shape = jax.ShapeDtypeStruct((n, ho * wo, cp), jnp.float32)
    scratch = [pltpu.VMEM((ho + 2, wo + 2, cp), jnp.float32)]      # padded conv1 output

    if stride != 1 or cin != cout:
        sd, bd = _fold_bn(params["bnd_g"], params["bnd_b"], params["bnd_m"],
                          params["bnd_v"], params["bd"])
        wdm = _pad_axis(params["wd"].reshape(cin, cout) * sd, 1, cp).astype(jnp.bfloat16)
        bdp = _pad_axis(bd.reshape(1, cout), 1, cp).astype(jnp.float32)
        xs = x[:, 0:(ho - 1) * stride + 1:stride,
                  0:(wo - 1) * stride + 1:stride, :]
        xs = xs.reshape(n, ho * wo, cin).astype(jnp.bfloat16)
        out2 = pl.pallas_call(
            functools.partial(_block_downsample_kernel,
                              stride=stride, ho=ho, wo=wo, cin=cin),
            out_shape=out_shape,
            grid=(n,),
            in_specs=common_in_specs + [
                pl.BlockSpec((1, ho * wo, cin), lambda i: (i, 0, 0)),
                pl.BlockSpec((cin, cp), lambda i: (0, 0)),
                pl.BlockSpec((1, cp), lambda i: (0, 0)),
            ],
            out_specs=out_spec,
            scratch_shapes=scratch,
            compiler_params=_compiler_params(),
        )(x_in, w1m, b1p, w2m, b2p, xs, wdm, bdp)
    else:
        r = _pad_axis(x, 3, cp).reshape(n, ho * wo, cp)
        out2 = pl.pallas_call(
            functools.partial(_block_identity_kernel,
                              stride=stride, ho=ho, wo=wo, cin=cin),
            out_shape=out_shape,
            grid=(n,),
            in_specs=common_in_specs + [
                pl.BlockSpec((1, ho * wo, cp), lambda i: (i, 0, 0)),
            ],
            out_specs=out_spec,
            scratch_shapes=scratch,
            compiler_params=_compiler_params(),
        )(x_in, w1m, b1p, w2m, b2p, r)

    out = out2.reshape(n, ho, wo, cp)[:, :, :, :cout]
    return jnp.transpose(out, (0, 3, 1, 2))                        # back to NCHW


# ---------------------------------------------------------------------------
# Pure-JAX reference (lax.conv, f32) for verification
# ---------------------------------------------------------------------------
def _bn_ref(y, g, b, m, v, eps=1e-5):
    return g * (y - m) / jnp.sqrt(v + eps) + b


def residual_block_reference(x_nchw, params, stride):
    x = jnp.transpose(x_nchw, (0, 2, 3, 1))
    dn = ("NHWC", "HWIO", "NHWC")
    y = lax.conv_general_dilated(x, params["w1"], (stride, stride),
                                 ((1, 1), (1, 1)), dimension_numbers=dn) + params["b1"]
    y = jnp.maximum(_bn_ref(y, params["bn1_g"], params["bn1_b"],
                            params["bn1_m"], params["bn1_v"]), 0.0)
    y = lax.conv_general_dilated(y, params["w2"], (1, 1),
                                 ((1, 1), (1, 1)), dimension_numbers=dn) + params["b2"]
    y = _bn_ref(y, params["bn2_g"], params["bn2_b"], params["bn2_m"], params["bn2_v"])
    cin, cout = params["w1"].shape[2], params["w1"].shape[3]
    if stride != 1 or cin != cout:
        r = lax.conv_general_dilated(x, params["wd"], (stride, stride),
                                     ((0, 0), (0, 0)), dimension_numbers=dn) + params["bd"]
        r = _bn_ref(r, params["bnd_g"], params["bnd_b"], params["bnd_m"], params["bnd_v"])
    else:
        r = x
    out = jnp.maximum(y + r, 0.0)
    return jnp.transpose(out, (0, 3, 1, 2))


# ---------------------------------------------------------------------------
def make_params(key, cin, cout):
    ks = jax.random.split(key, 12)
    f = lambda k, shape, scl: (jax.random.normal(k, shape, jnp.float32) * scl)
    p = {
        "w1": f(ks[0], (3, 3, cin, cout), 0.1),   # HWIO
        "b1": f(ks[1], (cout,), 0.05),
        "w2": f(ks[2], (3, 3, cout, cout), 0.1),
        "b2": f(ks[3], (cout,), 0.05),
        "bn1_g": 1.0 + f(ks[4], (cout,), 0.1),
        "bn1_b": f(ks[5], (cout,), 0.1),
        "bn1_m": f(ks[6], (cout,), 0.1),
        "bn1_v": 1.0 + jnp.abs(f(ks[7], (cout,), 0.1)),
        "bn2_g": 1.0 + f(ks[8], (cout,), 0.1),
        "bn2_b": f(ks[9], (cout,), 0.1),
        "bn2_m": f(ks[10], (cout,), 0.1),
        "bn2_v": 1.0 + jnp.abs(f(ks[11], (cout,), 0.1)),
    }
    kd = jax.random.split(ks[0], 6)
    p.update({
        "wd": f(kd[0], (1, 1, cin, cout), 0.1),
        "bd": f(kd[1], (cout,), 0.05),
        "bnd_g": 1.0 + f(kd[2], (cout,), 0.1),
        "bnd_b": f(kd[3], (cout,), 0.1),
        "bnd_m": f(kd[4], (cout,), 0.1),
        "bnd_v": 1.0 + jnp.abs(f(kd[5], (cout,), 0.1)),
    })
    return p


if __name__ == "__main__":
    key = jax.random.PRNGKey(0)
    configs = [
        # (N, Cin, Cout, H, W, stride)
        (2, 4, 8, 16, 16, 2),   # downsample residual path (stride 2, Cin != Cout)
        (2, 8, 8, 16, 16, 1),   # identity residual path
    ]
    for (N, CIN, COUT, H, W, STRIDE) in configs:
        key, kx, kp = jax.random.split(key, 3)
        x = jax.random.normal(kx, (N, CIN, H, W), jnp.float32)
        params = make_params(kp, CIN, COUT)

        out = jax.block_until_ready(residual_block_forward(x, params, STRIDE))
        ref = jax.block_until_ready(residual_block_reference(x, params, STRIDE))

        assert out.shape == (N, COUT, H // STRIDE, W // STRIDE), out.shape
        err = float(jnp.max(jnp.abs(out - ref)))
        # bf16 MXU inputs with f32 accumulation -> loosened tolerance vs f32 reference
        assert err < 5e-2, f"max abs error {err} (stride={STRIDE})"
    print("KERNEL_OK")
</pallas_src>

<mosaic_0001>
module attributes {stable_mosaic.version = 11 : i64} {
  func.func @_block_downsample_kernel(%arg0: i32, %arg1: memref<4x9x9x4xf32, #tpu.memory_space<vmem>>, %arg2: memref<9x4x128xbf16, #tpu.memory_space<vmem>>, %arg3: memref<1x128xf32, #tpu.memory_space<vmem>>, %arg4: memref<9x128x128xbf16, #tpu.memory_space<vmem>>, %arg5: memref<1x128xf32, #tpu.memory_space<vmem>>, %arg6: memref<1x64x4xbf16, #tpu.memory_space<vmem>>, %arg7: memref<4x128xbf16, #tpu.memory_space<vmem>>, %arg8: memref<1x128xf32, #tpu.memory_space<vmem>>, %arg9: memref<1x64x128xf32, #tpu.memory_space<vmem>>, %arg10: memref<10x10x128xf32, #tpu.memory_space<vmem>>) attributes {dimension_semantics = [#tpu.dimension_semantics<parallel>], iteration_bounds = array<i64: 2>, scalar_prefetch = 0 : i64, scratch_operands = 1 : i64, tpu.core_type = #tpu.core_type<tc>, window_params = [{transform_indices = @transform_0, window_bounds = array<i64: 4, 9, 9, 4>}, {pipeline_mode = #tpu.pipeline_mode<synchronous>, transform_indices = @transform_1, window_bounds = array<i64: 9, 4, 128>}, {pipeline_mode = #tpu.pipeline_mode<synchronous>, transform_indices = @transform_2, window_bounds = array<i64: 1, 128>}, {pipeline_mode = #tpu.pipeline_mode<synchronous>, transform_indices = @transform_3, window_bounds = array<i64: 9, 128, 128>}, {pipeline_mode = #tpu.pipeline_mode<synchronous>, transform_indices = @transform_4, window_bounds = array<i64: 1, 128>}, {transform_indices = @transform_5, window_bounds = array<i64: 1, 64, 4>}, {pipeline_mode = #tpu.pipeline_mode<synchronous>, transform_indices = @transform_6, window_bounds = array<i64: 4, 128>}, {pipeline_mode = #tpu.pipeline_mode<synchronous>, transform_indices = @transform_7, window_bounds = array<i64: 1, 128>}, {transform_indices = @transform_8, window_bounds = array<i64: 1, 64, 128>}]} {
    %c0 = arith.constant 0 : index
    %c0_0 = arith.constant 0 : index
    %c0_1 = arith.constant 0 : index
    %c0_2 = arith.constant 0 : index
    %0 = vector.load %arg1[%c0, %c0_0, %c0_1, %c0_2] : memref<4x9x9x4xf32, #tpu.memory_space<vmem>>, vector<1x9x9x4xf32>
    %1 = vector.shape_cast %0 : vector<1x9x9x4xf32> to vector<9x9x4xf32>
    %c1 = arith.constant 1 : index
    %c0_3 = arith.constant 0 : index
    %c0_4 = arith.constant 0 : index
    %c0_5 = arith.constant 0 : index
    %2 = vector.load %arg1[%c1, %c0_3, %c0_4, %c0_5] : memref<4x9x9x4xf32, #tpu.memory_space<vmem>>, vector<1x9x9x4xf32>
    %3 = vector.shape_cast %2 : vector<1x9x9x4xf32> to vector<9x9x4xf32>
    %c2 = arith.constant 2 : index
    %c0_6 = arith.constant 0 : index
    %c0_7 = arith.constant 0 : index
    %c0_8 = arith.constant 0 : index
    %4 = vector.load %arg1[%c2, %c0_6, %c0_7, %c0_8] : memref<4x9x9x4xf32, #tpu.memory_space<vmem>>, vector<1x9x9x4xf32>
    %5 = vector.shape_cast %4 : vector<1x9x9x4xf32> to vector<9x9x4xf32>
    %c3 = arith.constant 3 : index
    %c0_9 = arith.constant 0 : index
    %c0_10 = arith.constant 0 : index
    %c0_11 = arith.constant 0 : index
    %6 = vector.load %arg1[%c3, %c0_9, %c0_10, %c0_11] : memref<4x9x9x4xf32, #tpu.memory_space<vmem>>, vector<1x9x9x4xf32>
    %7 = vector.shape_cast %6 : vector<1x9x9x4xf32> to vector<9x9x4xf32>
    %8 = vector.extract_strided_slice %1 {offsets = [0, 0, 0], sizes = [8, 8, 4], strides = [1, 1, 1]} : vector<9x9x4xf32> to vector<8x8x4xf32>
    %9 = vector.extract_strided_slice %3 {offsets = [0, 0, 0], sizes = [8, 8, 4], strides = [1, 1, 1]} : vector<9x9x4xf32> to vector<8x8x4xf32>
    %10 = vector.extract_strided_slice %1 {offsets = [0, 1, 0], sizes = [8, 8, 4], strides = [1, 1, 1]} : vector<9x9x4xf32> to vector<8x8x4xf32>
    %11 = vector.extract_strided_slice %5 {offsets = [0, 0, 0], sizes = [8, 8, 4], strides = [1, 1, 1]} : vector<9x9x4xf32> to vector<8x8x4xf32>
    %12 = vector.extract_strided_slice %7 {offsets = [0, 0, 0], sizes = [8, 8, 4], strides = [1, 1, 1]} : vector<9x9x4xf32> to vector<8x8x4xf32>
    %13 = vector.extract_strided_slice %5 {offsets = [0, 1, 0], sizes = [8, 8, 4], strides = [1, 1, 1]} : vector<9x9x4xf32> to vector<8x8x4xf32>
    %14 = vector.extract_strided_slice %1 {offsets = [1, 0, 0], sizes = [8, 8, 4], strides = [1, 1, 1]} : vector<9x9x4xf32> to vector<8x8x4xf32>
    %15 = vector.extract_strided_slice %3 {offsets = [1, 0, 0], sizes = [8, 8, 4], strides = [1, 1, 1]} : vector<9x9x4xf32> to vector<8x8x4xf32>
    %16 = vector.extract_strided_slice %1 {offsets = [1, 1, 0], sizes = [8, 8, 4], strides = [1, 1, 1]} : vector<9x9x4xf32> to vector<8x8x4xf32>
    %17 = vector.shape_cast %8 : vector<8x8x4xf32> to vector<64x4xf32>
    %18 = arith.truncf %17 : vector<64x4xf32> to vector<64x4xbf16>
    %c0_12 = arith.constant 0 : index
    %c0_13 = arith.constant 0 : index
    %c0_14 = arith.constant 0 : index
    %19 = vector.load %arg2[%c0_12, %c0_13, %c0_14] : memref<9x4x128xbf16, #tpu.memory_space<vmem>>, vector<1x4x128xbf16>
    %20 = vector.shape_cast %19 : vector<1x4x128xbf16> to vector<4x128xbf16>
    %cst = arith.constant dense<0.000000e+00> : vector<64x128xf32>
    %21 = tpu.matmul %18, %20, %cst {dimension_numbers = #tpu.dot_dimension_numbers<[1], [0], [0], [1], [0, 0, 1, 1], [], []>} : vector<64x4xbf16>, vector<4x128xbf16>, vector<64x128xf32> -> vector<64x128xf32>
    %22 = vector.shape_cast %9 : vector<8x8x4xf32> to vector<64x4xf32>
    %23 = arith.truncf %22 : vector<64x4xf32> to vector<64x4xbf16>
    %c1_15 = arith.constant 1 : index
    %c0_16 = arith.constant 0 : index
    %c0_17 = arith.constant 0 : index
    %24 = vector.load %arg2[%c1_15, %c0_16, %c0_17] : memref<9x4x128xbf16, #tpu.memory_space<vmem>>, vector<1x4x128xbf16>
    %25 = vector.shape_cast %24 : vector<1x4x128xbf16> to vector<4x128xbf16>
    %cst_18 = arith.constant dense<0.000000e+00> : vector<64x128xf32>
    %26 = tpu.matmul %23, %25, %cst_18 {dimension_numbers = #tpu.dot_dimension_numbers<[1], [0], [0], [1], [0, 0, 1, 1], [], []>} : vector<64x4xbf16>, vector<4x128xbf16>, vector<64x128xf32> -> vector<64x128xf32>
    %27 = arith.addf %21, %26 : vector<64x128xf32>
    %28 = vector.shape_cast %10 : vector<8x8x4xf32> to vector<64x4xf32>
    %29 = arith.truncf %28 : vector<64x4xf32> to vector<64x4xbf16>
    %c2_19 = arith.constant 2 : index
    %c0_20 = arith.constant 0 : index
    %c0_21 = arith.constant 0 : index
    %30 = vector.load %arg2[%c2_19, %c0_20, %c0_21] : memref<9x4x128xbf16, #tpu.memory_space<vmem>>, vector<1x4x128xbf16>
    %31 = vector.shape_cast %30 : vector<1x4x128xbf16> to vector<4x128xbf16>
    %cst_22 = arith.constant dense<0.000000e+00> : vector<64x128xf32>
    %32 = tpu.matmul %29, %31, %cst_22 {dimension_numbers = #tpu.dot_dimension_numbers<[1], [0], [0], [1], [0, 0, 1, 1], [], []>} : vector<64x4xbf16>, vector<4x128xbf16>, vector<64x128xf32> -> vector<64x128xf32>
    %33 = arith.addf %27, %32 : vector<64x128xf32>
    %34 = vector.shape_cast %11 : vector<8x8x4xf32> to vector<64x4xf32>
    %35 = arith.truncf %34 : vector<64x4xf32> to vector<64x4xbf16>
    %c3_23 = arith.constant 3 : index
    %c0_24 = arith.constant 0 : index
    %c0_25 = arith.constant 0 : index
    %36 = vector.load %arg2[%c3_23, %c0_24, %c0_25] : memref<9x4x128xbf16, #tpu.memory_space<vmem>>, vector<1x4x128xbf16>
    %37 = vector.shape_cast %36 : vector<1x4x128xbf16> to vector<4x128xbf16>
    %cst_26 = arith.constant dense<0.000000e+00> : vector<64x128xf32>
    %38 = tpu.matmul %35, %37, %cst_26 {dimension_numbers = #tpu.dot_dimension_numbers<[1], [0], [0], [1], [0, 0, 1, 1], [], []>} : vector<64x4xbf16>, vector<4x128xbf16>, vector<64x128xf32> -> vector<64x128xf32>
    %39 = arith.addf %33, %38 : vector<64x128xf32>
    %40 = vector.shape_cast %12 : vector<8x8x4xf32> to vector<64x4xf32>
    %41 = arith.truncf %40 : vector<64x4xf32> to vector<64x4xbf16>
    %c4 = arith.constant 4 : index
    %c0_27 = arith.constant 0 : index
    %c0_28 = arith.constant 0 : index
    %42 = vector.load %arg2[%c4, %c0_27, %c0_28] : memref<9x4x128xbf16, #tpu.memory_space<vmem>>, vector<1x4x128xbf16>
    %43 = vector.shape_cast %42 : vector<1x4x128xbf16> to vector<4x128xbf16>
    %cst_29 = arith.constant dense<0.000000e+00> : vector<64x128xf32>
    %44 = tpu.matmul %41, %43, %cst_29 {dimension_numbers = #tpu.dot_dimension_numbers<[1], [0], [0], [1], [0, 0, 1, 1], [], []>} : vector<64x4xbf16>, vector<4x128xbf16>, vector<64x128xf32> -> vector<64x128xf32>
    %45 = arith.addf %39, %44 : vector<64x128xf32>
    %46 = vector.shape_cast %13 : vector<8x8x4xf32> to vector<64x4xf32>
    %47 = arith.truncf %46 : vector<64x4xf32> to vector<64x4xbf16>
    %c5 = arith.constant 5 : index
    %c0_30 = arith.constant 0 : index
    %c0_31 = arith.constant 0 : index
    %48 = vector.load %arg2[%c5, %c0_30, %c0_31] : memref<9x4x128xbf16, #tpu.memory_space<vmem>>, vector<1x4x128xbf16>
    %49 = vector.shape_cast %48 : vector<1x4x128xbf16> to vector<4x128xbf16>
    %cst_32 = arith.constant dense<0.000000e+00> : vector<64x128xf32>
    %50 = tpu.matmul %47, %49, %cst_32 {dimension_numbers = #tpu.dot_dimension_numbers<[1], [0], [0], [1], [0, 0, 1, 1], [], []>} : vector<64x4xbf16>, vector<4x128xbf16>, vector<64x128xf32> -> vector<64x128xf32>
    %51 = arith.addf %45, %50 : vector<64x128xf32>
    %52 = vector.shape_cast %14 : vector<8x8x4xf32> to vector<64x4xf32>
    %53 = arith.truncf %52 : vector<64x4xf32> to vector<64x4xbf16>
    %c6 = arith.constant 6 : index
    %c0_33 = arith.constant 0 : index
    %c0_34 = arith.constant 0 : index
    %54 = vector.load %arg2[%c6, %c0_33, %c0_34] : memref<9x4x128xbf16, #tpu.memory_space<vmem>>, vector<1x4x128xbf16>
    %55 = vector.shape_cast %54 : vector<1x4x128xbf16> to vector<4x128xbf16>
    %cst_35 = arith.constant dense<0.000000e+00> : vector<64x128xf32>
    %56 = tpu.matmul %53, %55, %cst_35 {dimension_numbers = #tpu.dot_dimension_numbers<[1], [0], [0], [1], [0, 0, 1, 1], [], []>} : vector<64x4xbf16>, vector<4x128xbf16>, vector<64x128xf32> -> vector<64x128xf32>
    %57 = arith.addf %51, %56 : vector<64x128xf32>
    %58 = vector.shape_cast %15 : vector<8x8x4xf32> to vector<64x4xf32>
    %59 = arith.truncf %58 : vector<64x4xf32> to vector<64x4xbf16>
    %c7 = arith.constant 7 : index
    %c0_36 = arith.constant 0 : index
    %c0_37 = arith.constant 0 : index
    %60 = vector.load %arg2[%c7, %c0_36, %c0_37] : memref<9x4x128xbf16, #tpu.memory_space<vmem>>, vector<1x4x128xbf16>
    %61 = vector.shape_cast %60 : vector<1x4x128xbf16> to vector<4x128xbf16>
    %cst_38 = arith.constant dense<0.000000e+00> : vector<64x128xf32>
    %62 = tpu.matmul %59, %61, %cst_38 {dimension_numbers = #tpu.dot_dimension_numbers<[1], [0], [0], [1], [0, 0, 1, 1], [], []>} : vector<64x4xbf16>, vector<4x128xbf16>, vector<64x128xf32> -> vector<64x128xf32>
    %63 = arith.addf %57, %62 : vector<64x128xf32>
    %64 = vector.shape_cast %16 : vector<8x8x4xf32> to vector<64x4xf32>
    %65 = arith.truncf %64 : vector<64x4xf32> to vector<64x4xbf16>
    %c8 = arith.constant 8 : index
    %c0_39 = arith.constant 0 : index
    %c0_40 = arith.constant 0 : index
    %66 = vector.load %arg2[%c8, %c0_39, %c0_40] : memref<9x4x128xbf16, #tpu.memory_space<vmem>>, vector<1x4x128xbf16>
    %67 = vector.shape_cast %66 : vector<1x4x128xbf16> to vector<4x128xbf16>
    %cst_41 = arith.constant dense<0.000000e+00> : vector<64x128xf32>
    %68 = tpu.matmul %65, %67, %cst_41 {dimension_numbers = #tpu.dot_dimension_numbers<[1], [0], [0], [1], [0, 0, 1, 1], [], []>} : vector<64x4xbf16>, vector<4x128xbf16>, vector<64x128xf32> -> vector<64x128xf32>
    %69 = arith.addf %63, %68 : vector<64x128xf32>
    %c0_42 = arith.constant 0 : index
    %c0_43 = arith.constant 0 : index
    %70 = vector.load %arg3[%c0_42, %c0_43] : memref<1x128xf32, #tpu.memory_space<vmem>>, vector<1x128xf32>
    %71 = vector.broadcast %70 : vector<1x128xf32> to vector<64x128xf32>
    %72 = arith.addf %69, %71 : vector<64x128xf32>
    %cst_44 = arith.constant 0.000000e+00 : f32
    %73 = vector.broadcast %cst_44 : f32 to vector<64x128xf32>
    %74 = arith.maximumf %72, %73 : vector<64x128xf32>
    %cst_45 = arith.constant 0.000000e+00 : f32
    %75 = vector.broadcast %cst_45 : f32 to vector<10x10x128xf32>
    %c0_46 = arith.constant 0 : index
    %c0_47 = arith.constant 0 : index
    %c0_48 = arith.constant 0 : index
    %76 = vector.load %arg10[%c0_46, %c0_47, %c0_48] : memref<10x10x128xf32, #tpu.memory_space<vmem>>, vector<10x10x128xf32>
    tpu.vector_store %arg10[%c0_46, %c0_47, %c0_48], %75 {strides = array<i32>} : memref<10x10x128xf32, #tpu.memory_space<vmem>>, vector<10x10x128xf32>,
    %77 = vector.shape_cast %74 : vector<64x128xf32> to vector<8x8x128xf32>
    %c1_49 = arith.constant 1 : index
    %c1_50 = arith.constant 1 : index
    %c0_51 = arith.constant 0 : index
    %78 = vector.load %arg10[%c1_49, %c1_50, %c0_51] : memref<10x10x128xf32, #tpu.memory_space<vmem>>, vector<8x8x128xf32>
    tpu.vector_store %arg10[%c1_49, %c1_50, %c0_51], %77 {strides = array<i32>} : memref<10x10x128xf32, #tpu.memory_space<vmem>>, vector<8x8x128xf32>,
    %c0_52 = arith.constant 0 : index
    %c0_53 = arith.constant 0 : index
    %c0_54 = arith.constant 0 : index
    %79 = vector.load %arg10[%c0_52, %c0_53, %c0_54] : memref<10x10x128xf32, #tpu.memory_space<vmem>>, vector<8x8x128xf32>
    %80 = vector.shape_cast %79 : vector<8x8x128xf32> to vector<64x128xf32>
    %81 = arith.truncf %80 : vector<64x128xf32> to vector<64x128xbf16>
    %c0_55 = arith.constant 0 : index
    %c0_56 = arith.constant 0 : index
    %c0_57 = arith.constant 0 : index
    %82 = vector.load %arg4[%c0_55, %c0_56, %c0_57] : memref<9x128x128xbf16, #tpu.memory_space<vmem>>, vector<1x128x128xbf16>
    %83 = vector.shape_cast %82 : vector<1x128x128xbf16> to vector<128x128xbf16>
    %cst_58 = arith.constant dense<0.000000e+00> : vector<64x128xf32>
    %84 = tpu.matmul %81, %83, %cst_58 {dimension_numbers = #tpu.dot_dimension_numbers<[1], [0], [0], [1], [0, 0, 1, 1], [], []>} : vector<64x128xbf16>, vector<128x128xbf16>, vector<64x128xf32> -> vector<64x128xf32>
    %c0_59 = arith.constant 0 : index
    %c1_60 = arith.constant 1 : index
    %c0_61 = arith.constant 0 : index
    %85 = vector.load %arg10[%c0_59, %c1_60, %c0_61] : memref<10x10x128xf32, #tpu.memory_space<vmem>>, vector<8x8x128xf32>
    %86 = vector.shape_cast %85 : vector<8x8x128xf32> to vector<64x128xf32>
    %87 = arith.truncf %86 : vector<64x128xf32> to vector<64x128xbf16>
    %c1_62 = arith.constant 1 : index
    %c0_63 = arith.constant 0 : index
    %c0_64 = arith.constant 0 : index
    %88 = vector.load %arg4[%c1_62, %c0_63, %c0_64] : memref<9x128x128xbf16, #tpu.memory_space<vmem>>, vector<1x128x128xbf16>
    %89 = vector.shape_cast %88 : vector<1x128x128xbf16> to vector<128x128xbf16>
    %cst_65 = arith.constant dense<0.000000e+00> : vector<64x128xf32>
    %90 = tpu.matmul %87, %89, %cst_65 {dimension_numbers = #tpu.dot_dimension_numbers<[1], [0], [0], [1], [0, 0, 1, 1], [], []>} : vector<64x128xbf16>, vector<128x128xbf16>, vector<64x128xf32> -> vector<64x128xf32>
    %91 = arith.addf %84, %90 : vector<64x128xf32>
    %c0_66 = arith.constant 0 : index
    %c2_67 = arith.constant 2 : index
    %c0_68 = arith.constant 0 : index
    %92 = vector.load %arg10[%c0_66, %c2_67, %c0_68] : memref<10x10x128xf32, #tpu.memory_space<vmem>>, vector<8x8x128xf32>
    %93 = vector.shape_cast %92 : vector<8x8x128xf32> to vector<64x128xf32>
    %94 = arith.truncf %93 : vector<64x128xf32> to vector<64x128xbf16>
    %c2_69 = arith.constant 2 : index
    %c0_70 = arith.constant 0 : index
    %c0_71 = arith.constant 0 : index
    %95 = vector.load %arg4[%c2_69, %c0_70, %c0_71] : memref<9x128x128xbf16, #tpu.memory_space<vmem>>, vector<1x128x128xbf16>
    %96 = vector.shape_cast %95 : vector<1x128x128xbf16> to vector<128x128xbf16>
    %cst_72 = arith.constant dense<0.000000e+00> : vector<64x128xf32>
    %97 = tpu.matmul %94, %96, %cst_72 {dimension_numbers = #tpu.dot_dimension_numbers<[1], [0], [0], [1], [0, 0, 1, 1], [], []>} : vector<64x128xbf16>, vector<128x128xbf16>, vector<64x128xf32> -> vector<64x128xf32>
    %98 = arith.addf %91, %97 : vector<64x128xf32>
    %c1_73 = arith.constant 1 : index
    %c0_74 = arith.constant 0 : index
    %c0_75 = arith.constant 0 : index
    %99 = vector.load %arg10[%c1_73, %c0_74, %c0_75] : memref<10x10x128xf32, #tpu.memory_space<vmem>>, vector<8x8x128xf32>
    %100 = vector.shape_cast %99 : vector<8x8x128xf32> to vector<64x128xf32>
    %101 = arith.truncf %100 : vector<64x128xf32> to vector<64x128xbf16>
    %c3_76 = arith.constant 3 : index
    %c0_77 = arith.constant 0 : index
    %c0_78 = arith.constant 0 : index
    %102 = vector.load %arg4[%c3_76, %c0_77, %c0_78] : memref<9x128x128xbf16, #tpu.memory_space<vmem>>, vector<1x128x128xbf16>
    %103 = vector.shape_cast %102 : vector<1x128x128xbf16> to vector<128x128xbf16>
    %cst_79 = arith.constant dense<0.000000e+00> : vector<64x128xf32>
    %104 = tpu.matmul %101, %103, %cst_79 {dimension_numbers = #tpu.dot_dimension_numbers<[1], [0], [0], [1], [0, 0, 1, 1], [], []>} : vector<64x128xbf16>, vector<128x128xbf16>, vector<64x128xf32> -> vector<64x128xf32>
    %105 = arith.addf %98, %104 : vector<64x128xf32>
    %c1_80 = arith.constant 1 : index
    %c1_81 = arith.constant 1 : index
    %c0_82 = arith.constant 0 : index
    %106 = vector.load %arg10[%c1_80, %c1_81, %c0_82] : memref<10x10x128xf32, #tpu.memory_space<vmem>>, vector<8x8x128xf32>
    %107 = vector.shape_cast %106 : vector<8x8x128xf32> to vector<64x128xf32>
    %108 = arith.truncf %107 : vector<64x128xf32> to vector<64x128xbf16>
    %c4_83 = arith.constant 4 : index
    %c0_84 = arith.constant 0 : index
    %c0_85 = arith.constant 0 : index
    %109 = vector.load %arg4[%c4_83, %c0_84, %c0_85] : memref<9x128x128xbf16, #tpu.memory_space<vmem>>, vector<1x128x128xbf16>
    %110 = vector.shape_cast %109 : vector<1x128x128xbf16> to vector<128x128xbf16>
    %cst_86 = arith.constant dense<0.000000e+00> : vector<64x128xf32>
    %111 = tpu.matmul %108, %110, %cst_86 {dimension_numbers = #tpu.dot_dimension_numbers<[1], [0], [0], [1], [0, 0, 1, 1], [], []>} : vector<64x128xbf16>, vector<128x128xbf16>, vector<64x128xf32> -> vector<64x128xf32>
    %112 = arith.addf %105, %111 : vector<64x128xf32>
    %c1_87 = arith.constant 1 : index
    %c2_88 = arith.constant 2 : index
    %c0_89 = arith.constant 0 : index
    %113 = vector.load %arg10[%c1_87, %c2_88, %c0_89] : memref<10x10x128xf32, #tpu.memory_space<vmem>>, vector<8x8x128xf32>
    %114 = vector.shape_cast %113 : vector<8x8x128xf32> to vector<64x128xf32>
    %115 = arith.truncf %114 : vector<64x128xf32> to vector<64x128xbf16>
    %c5_90 = arith.constant 5 : index
    %c0_91 = arith.constant 0 : index
    %c0_92 = arith.constant 0 : index
    %116 = vector.load %arg4[%c5_90, %c0_91, %c0_92] : memref<9x128x128xbf16, #tpu.memory_space<vmem>>, vector<1x128x128xbf16>
    %117 = vector.shape_cast %116 : vector<1x128x128xbf16> to vector<128x128xbf16>
    %cst_93 = arith.constant dense<0.000000e+00> : vector<64x128xf32>
    %118 = tpu.matmul %115, %117, %cst_93 {dimension_numbers = #tpu.dot_dimension_numbers<[1], [0], [0], [1], [0, 0, 1, 1], [], []>} : vector<64x128xbf16>, vector<128x128xbf16>, vector<64x128xf32> -> vector<64x128xf32>
    %119 = arith.addf %112, %118 : vector<64x128xf32>
    %c2_94 = arith.constant 2 : index
    %c0_95 = arith.constant 0 : index
    %c0_96 = arith.constant 0 : index
    %120 = vector.load %arg10[%c2_94, %c0_95, %c0_96] : memref<10x10x128xf32, #tpu.memory_space<vmem>>, vector<8x8x128xf32>
    %121 = vector.shape_cast %120 : vector<8x8x128xf32> to vector<64x128xf32>
    %122 = arith.truncf %121 : vector<64x128xf32> to vector<64x128xbf16>
    %c6_97 = arith.constant 6 : index
    %c0_98 = arith.constant 0 : index
    %c0_99 = arith.constant 0 : index
    %123 = vector.load %arg4[%c6_97, %c0_98, %c0_99] : memref<9x128x128xbf16, #tpu.memory_space<vmem>>, vector<1x128x128xbf16>
    %124 = vector.shape_cast %123 : vector<1x128x128xbf16> to vector<128x128xbf16>
    %cst_100 = arith.constant dense<0.000000e+00> : vector<64x128xf32>
    %125 = tpu.matmul %122, %124, %cst_100 {dimension_numbers = #tpu.dot_dimension_numbers<[1], [0], [0], [1], [0, 0, 1, 1], [], []>} : vector<64x128xbf16>, vector<128x128xbf16>, vector<64x128xf32> -> vector<64x128xf32>
    %126 = arith.addf %119, %125 : vector<64x128xf32>
    %c2_101 = arith.constant 2 : index
    %c1_102 = arith.constant 1 : index
    %c0_103 = arith.constant 0 : index
    %127 = vector.load %arg10[%c2_101, %c1_102, %c0_103] : memref<10x10x128xf32, #tpu.memory_space<vmem>>, vector<8x8x128xf32>
    %128 = vector.shape_cast %127 : vector<8x8x128xf32> to vector<64x128xf32>
    %129 = arith.truncf %128 : vector<64x128xf32> to vector<64x128xbf16>
    %c7_104 = arith.constant 7 : index
    %c0_105 = arith.constant 0 : index
    %c0_106 = arith.constant 0 : index
    %130 = vector.load %arg4[%c7_104, %c0_105, %c0_106] : memref<9x128x128xbf16, #tpu.memory_space<vmem>>, vector<1x128x128xbf16>
    %131 = vector.shape_cast %130 : vector<1x128x128xbf16> to vector<128x128xbf16>
    %cst_107 = arith.constant dense<0.000000e+00> : vector<64x128xf32>
    %132 = tpu.matmul %129, %131, %cst_107 {dimension_numbers = #tpu.dot_dimension_numbers<[1], [0], [0], [1], [0, 0, 1, 1], [], []>} : vector<64x128xbf16>, vector<128x128xbf16>, vector<64x128xf32> -> vector<64x128xf32>
    %133 = arith.addf %126, %132 : vector<64x128xf32>
    %c2_108 = arith.constant 2 : index
    %c2_109 = arith.constant 2 : index
    %c0_110 = arith.constant 0 : index
    %134 = vector.load %arg10[%c2_108, %c2_109, %c0_110] : memref<10x10x128xf32, #tpu.memory_space<vmem>>, vector<8x8x128xf32>
    %135 = vector.shape_cast %134 : vector<8x8x128xf32> to vector<64x128xf32>
    %136 = arith.truncf %135 : vector<64x128xf32> to vector<64x128xbf16>
    %c8_111 = arith.constant 8 : index
    %c0_112 = arith.constant 0 : index
    %c0_113 = arith.constant 0 : index
    %137 = vector.load %arg4[%c8_111, %c0_112, %c0_113] : memref<9x128x128xbf16, #tpu.memory_space<vmem>>, vector<1x128x128xbf16>
    %138 = vector.shape_cast %137 : vector<1x128x128xbf16> to vector<128x128xbf16>
    %cst_114 = arith.constant dense<0.000000e+00> : vector<64x128xf32>
    %139 = tpu.matmul %136, %138, %cst_114 {dimension_numbers = #tpu.dot_dimension_numbers<[1], [0], [0], [1], [0, 0, 1, 1], [], []>} : vector<64x128xbf16>, vector<128x128xbf16>, vector<64x128xf32> -> vector<64x128xf32>
    %140 = arith.addf %133, %139 : vector<64x128xf32>
    %c0_115 = arith.constant 0 : index
    %c0_116 = arith.constant 0 : index
    %141 = vector.load %arg5[%c0_115, %c0_116] : memref<1x128xf32, #tpu.memory_space<vmem>>, vector<1x128xf32>
    %142 = vector.broadcast %141 : vector<1x128xf32> to vector<64x128xf32>
    %143 = arith.addf %140, %142 : vector<64x128xf32>
    %c0_117 = arith.constant 0 : index
    %c0_118 = arith.constant 0 : index
    %c0_119 = arith.constant 0 : index
    %144 = vector.load %arg6[%c0_117, %c0_118, %c0_119] : memref<1x64x4xbf16, #tpu.memory_space<vmem>>, vector<1x64x4xbf16>
    %145 = vector.shape_cast %144 : vector<1x64x4xbf16> to vector<64x4xbf16>
    %c0_120 = arith.constant 0 : index
    %c0_121 = arith.constant 0 : index
    %146 = vector.load %arg7[%c0_120, %c0_121] : memref<4x128xbf16, #tpu.memory_space<vmem>>, vector<4x128xbf16>
    %cst_122 = arith.constant dense<0.000000e+00> : vector<64x128xf32>
    %147 = tpu.matmul %145, %146, %cst_122 {dimension_numbers = #tpu.dot_dimension_numbers<[1], [0], [0], [1], [0, 0, 1, 1], [], []>} : vector<64x4xbf16>, vector<4x128xbf16>, vector<64x128xf32> -> vector<64x128xf32>
    %c0_123 = arith.constant 0 : index
    %c0_124 = arith.constant 0 : index
    %148 = vector.load %arg8[%c0_123, %c0_124] : memref<1x128xf32, #tpu.memory_space<vmem>>, vector<1x128xf32>
    %149 = vector.broadcast %148 : vector<1x128xf32> to vector<64x128xf32>
    %150 = arith.addf %147, %149 : vector<64x128xf32>
    %151 = arith.addf %143, %150 : vector<64x128xf32>
    %cst_125 = arith.constant 0.000000e+00 : f32
    %152 = vector.broadcast %cst_125 : f32 to vector<64x128xf32>
    %153 = arith.maximumf %151, %152 : vector<64x128xf32>
    %c0_126 = arith.constant 0 : index
    %c0_127 = arith.constant 0 : index
    %c0_128 = arith.constant 0 : index
    %154 = vector.load %arg9[%c0_126, %c0_127, %c0_128] : memref<1x64x128xf32, #tpu.memory_space<vmem>>, vector<1x64x128xf32>
    %155 = vector.shape_cast %154 : vector<1x64x128xf32> to vector<64x128xf32>
    %156 = vector.shape_cast %153 : vector<64x128xf32> to vector<1x64x128xf32>
    tpu.vector_store %arg9[%c0_126, %c0_127, %c0_128], %156 {strides = array<i32>} : memref<1x64x128xf32, #tpu.memory_space<vmem>>, vector<1x64x128xf32>,
    return
  }
  func.func @transform_0(%arg0: i32) -> (i32, i32, i32, i32) {
    %c0_i32 = arith.constant 0 : i32
    %c0_i32_0 = arith.constant 0 : i32
    %c0_i32_1 = arith.constant 0 : i32
    %c0_i32_2 = arith.constant 0 : i32
    return %arg0, %c0_i32, %c0_i32_0, %c0_i32_1 : i32, i32, i32, i32
  }
  func.func @transform_1(%arg0: i32) -> (i32, i32, i32) {
    %c0_i32 = arith.constant 0 : i32
    %c0_i32_0 = arith.constant 0 : i32
    %c0_i32_1 = arith.constant 0 : i32
    %c0_i32_2 = arith.constant 0 : i32
    return %c0_i32, %c0_i32_0, %c0_i32_1 : i32, i32, i32
  }
  func.func @transform_2(%arg0: i32) -> (i32, i32) {
    %c0_i32 = arith.constant 0 : i32
    %c0_i32_0 = arith.constant 0 : i32
    %c0_i32_1 = arith.constant 0 : i32
    return %c0_i32, %c0_i32_0 : i32, i32
  }
  func.func @transform_3(%arg0: i32) -> (i32, i32, i32) {
    %c0_i32 = arith.constant 0 : i32
    %c0_i32_0 = arith.constant 0 : i32
    %c0_i32_1 = arith.constant 0 : i32
    %c0_i32_2 = arith.constant 0 : i32
    return %c0_i32, %c0_i32_0, %c0_i32_1 : i32, i32, i32
  }
  func.func @transform_4(%arg0: i32) -> (i32, i32) {
    %c0_i32 = arith.constant 0 : i32
    %c0_i32_0 = arith.constant 0 : i32
    %c0_i32_1 = arith.constant 0 : i32
    return %c0_i32, %c0_i32_0 : i32, i32
  }
  func.func @transform_5(%arg0: i32) -> (i32, i32, i32) {
    %c0_i32 = arith.constant 0 : i32
    %c0_i32_0 = arith.constant 0 : i32
    %c0_i32_1 = arith.constant 0 : i32
    return %arg0, %c0_i32, %c0_i32_0 : i32, i32, i32
  }
  func.func @transform_6(%arg0: i32) -> (i32, i32) {
    %c0_i32 = arith.constant 0 : i32
    %c0_i32_0 = arith.constant 0 : i32
    %c0_i32_1 = arith.constant 0 : i32
    return %c0_i32, %c0_i32_0 : i32, i32
  }
  func.func @transform_7(%arg0: i32) -> (i32, i32) {
    %c0_i32 = arith.constant 0 : i32
    %c0_i32_0 = arith.constant 0 : i32
    %c0_i32_1 = arith.constant 0 : i32
    return %c0_i32, %c0_i32_0 : i32, i32
  }
  func.func @transform_8(%arg0: i32) -> (i32, i32, i32) {
    %c0_i32 = arith.constant 0 : i32
    %c0_i32_0 = arith.constant 0 : i32
    %c0_i32_1 = arith.constant 0 : i32
    return %arg0, %c0_i32, %c0_i32_0 : i32, i32, i32
  }
}

</mosaic_0001>

<bundles_post_ra>
// kernel: tpu_custom_call.1
= control target key start
LH: loop header
LB: loop body
LE: loop exit
PB: predicated region body
PF: predicated region fallthrough
CT: control target
= control target key end

     0   :  { %13 = vsyncpa [#allocation4], 0  ;;  %s3951_s0 = inlined_call_operand.vmem [shape: f32[8,9,9,4], index: 0, kind: input, shape index: {}]   ;;  %s3952_s1 = inlined_call_operand.vmem [shape: bf16[9,4,128], index: 1, kind: input, shape index: {}]   ;;  %s3953_s2 = inlined_call_operand.vmem [shape: f32[1,128], index: 2, kind: input, shape index: {}]   ;;  %s3954_s3 = inlined_call_operand.vmem [shape: bf16[9,128,128], index: 3, kind: input, shape index: {}]   ;;  %s3955_s4 = inlined_call_operand.vmem [shape: f32[1,128], index: 4, kind: input, shape index: {}]   ;;  %s3956_s5 = inlined_call_operand.vmem [shape: bf16[2,64,4], index: 5, kind: input, shape index: {}]   ;;  %s3957_s6 = inlined_call_operand.vmem [shape: bf16[4,128], index: 6, kind: input, shape index: {}]   ;;  %s3958_s7 = inlined_call_operand.vmem [shape: f32[1,128], index: 7, kind: input, shape index: {}]   ;;  %s3959_s8 = inlined_call_operand.hbm [shape: f32[2,64,128], index: 8, kind: output, shape index: {}]  }
   0x1   :  { %15 = vsyncpa [#allocation4 + $0x1], 0  ;;  %s3022_s27 = smov 0   ;;  %s3024_s28 = smov 0  }
   0x2   :  { %s3026_s29 = smov 0   ;;  %s3028_s30 = smov 0  }
   0x3 LB: > { %s3043_s9 = sadd.s32 4294967295, %s2972_s30   ;;  %s2256_s10 = sadd.s32 4294967294, %s2972_s30   ;;  %s2972_s30 = sphi %s3028_s30, %s3965_s30   ;;  %s2968_s29 = sphi %s3026_s29, %s3964_s29   ;;  %s2964_s28 = sphi %s3024_s28, %s3963_s28   ;;  %s2960_s27 = sphi %s3022_s27, %s3962_s27  }
   0x4   : > { %s3047_s11 = sadd.s32 1, %s2972_s30   ;;  %s206_s12 = sadd.s32 1, %s2968_s29 }
   0x5   : > { %s203_s13 = ssub.s32 %s2972_s30, %s3047_s11  ;;  %p216_p0 = scmp.ne.s32.totalorder %s2968_s29, %s2964_s28 }
   0x6   : > { %p204_p1 = scmp.eq.s32.totalorder %s203_s13, 0  ;;  %p217_p2 = scmp.eq.s32.totalorder %s3043_s9, 1 }
   0x7   : > { %p222_p3 = scmp.ne.s32.totalorder %s2964_s28, %s2960_s27  ;;  %p223_p4 = scmp.eq.s32.totalorder %s2256_s10, 1 }
   0x8   : > { %s3058_s14 = scalar_select %p204_p1, %s2968_s29, %s206_s12  }
   0x9   : > { %p3060_p5 = por %p217_p2, %p216_p0  ;;  %p3064_p6 = por %p223_p4, %p222_p3 }
   0xa   : > { %p2259_p7 = scmp.ge.s32.totalorder %s2972_s30, 1  ;;  %p277_p8 = scmp.lt.s32.totalorder %s2972_s30, 3 }
   0xc   : > { %p278_p9 = pnand %p2259_p7, %p277_p8 }
   0xd   : > { %s2261_s19 = sshll.u32 (!%p278_p9), %s3043_s9, 2  ;;  %p324_p11 = scmp.lt.s32.totalorder (!%p278_p9), %s3043_s9, 1 }
   0xe   : > { %281 = sbr.rel (%p278_p9) target bundleno = 639 (0x27f), region = 52  ;;  %p318_p10 = scmp.lt.s32.totalorder (!%p278_p9), %s2261_s19, 7 }
   0xf   : > { %s314_s12 = sand.u32 (!%p278_p9), 1, %s2964_s28   ;;  %s2860_s18 = sshll.u32 (!%p278_p9), %s3043_s9, 6 }
  0x10   : > { %s2178_s21 = scalar_lea.hbm (!%p278_p9), %s3959_s8, %s2860_s18 }
  0x13   : > { %v2298_v0 = vld [vmem:[%s3952_s1 + $0x2] sm:$0x3]  ;;  %vm408_vm0 = vcmask 1041408   ;;  %v388_v2 = vld [vmem:[%s3952_s1] sm:$0x3]  ;;  %s3967_s19 = smov (!%p318_p10, %s2261_s19), 7 }
  0x14   : > { %v410_v1 = vsel %vm408_vm0, %v2298_v0, 0  ;;  %v2307_v3 = vld [vmem:[%s3952_s1 + $0x4] sm:$0x3]  ;;  %v454_v4 = vsel %vm408_vm0, %v388_v2, 0  ;;  %v2312_v6 = vld [vmem:[%s3952_s1 + $0x6] sm:$0x3] }
  0x15   : > { %419 = vmatpush.bf16.msra.mxu0 %v410_v1  ;;  %v553_v5 = vsel %vm408_vm0, %v2307_v3, 0  ;;  %v611_v7 = vsel %vm408_vm0, %v2312_v6, 0  ;;  %2861 = vmatpush.bf16.msra.mxu1 %v454_v4  ;;  %s2864_s26 = smul.u32 144, %s3967_s19  ;;  %vm395_vm1 = vcmask 31744   ;;  %vm501_vm2 = vcmask 1046528  }
  0x16   : > { %562 = vmatpush.bf16.msra.mxu2 %v553_v5  ;;  %2862 = vmatpush.bf16.msra.mxu3 %v553_v5  ;;  %v2332_v46 = vld [vmem:[%s3952_s1 + $0xe] sm:$0x3]  ;;  %s325_s19 = scalar_select %p324_p11, %s3043_s9, 1 }
  0x17   : > { %s3090_s13 = scalar_lea.vmem %s3951_s0, %s2864_s26  ;;  %v891_v49 = vsel %vm408_vm0, %v2332_v46, 0  ;;  %s2167_s9 = scalar_lea.sflag [#allocation4], %s314_s12 }
  0x18   : > { %v2265_v8 = vld [vmem:[%s3090_s13 + $0x90] sm:$0xff]  ;;  %v3094_v9 = vld [vmem:[%s3090_s13 + $0xa0] sm:$0xff]  ;;  %v331_v12 = vld [vmem:[%s3090_s13 + $0x8] sm:$0x1]  ;;  %s2783_s20 = sshll.u32 %s325_s19, 5 }
  0x19   : > { %463 = vmatpush.bf16.msrb.mxu0 %v454_v4  ;;  %v3097_v10 = vld [vmem:[%s3090_s13] sm:$0xff]  ;;  %v389_v11 = vpack.c.bf16 %v3094_v9, %v2265_v8  ;;  %v3102_v13 = vld [vmem:[%s3090_s13 + $0x10] sm:$0xff]  ;;  %v333_v14 = vld [vmem:[%s3090_s13 + $0x18] sm:$0x1]  ;;  %v503_v16 = vrot.slane %v331_v12, 1  ;;  %s3791_s23 = scalar_lea.vmem %s3956_s5, %s2783_s20 }
  0x1a   : > { %620 = vmatpush.bf16.msrb.mxu3 %v611_v7  ;;  %v502_v15 = vrot.slane %v3097_v10, 1  ;;  %v505_v17 = vrot.slane %v3102_v13, 1  ;;  %v506_v18 = vrot.slane %v333_v14, 1  ;;  %v3108_v19 = vld [vmem:[%s3090_s13 + $0x60] sm:$0xff]  ;;  %v343_v20 = vld [vmem:[%s3090_s13 + $0x68] sm:$0x1] }
  0x1b   : > { %2299 = vmatmul.msk.bf16.vlgmr.msra.gmra.mxu0 %vm395_vm1, %v389_v11  ;;  %v3113_v21 = vld [vmem:[%s3090_s13 + $0x70] sm:$0xff]  ;;  %v345_v22 = vld [vmem:[%s3090_s13 + $0x78] sm:$0x1]  ;;  %v520_v23 = vrot.slane %v3108_v19, 1  ;;  %v521_v24 = vrot.slane %v343_v20, 1  ;;  %v3126_v30 = vld [vmem:[%s3090_s13 + $0x20] sm:$0xff] }
  0x1c   : > { %v504_v25 = vsel %vm501_vm2, %v502_v15, %v503_v16  ;;  %v3119_v26 = vsel %vm501_vm2, %v505_v17, %v506_v18  ;;  %v523_v27 = vrot.slane %v3113_v21, 1  ;;  %v524_v28 = vrot.slane %v345_v22, 1  ;;  %v3123_v29 = vld [vmem:[%s3090_s13 + $0xb0] sm:$0xff]  ;;  %v335_v35 = vld [vmem:[%s3090_s13 + $0x28] sm:$0x1]  ;;  %v3165_v50 = vld [vmem:[%s3090_s13 + $0xc0] sm:$0xff] }
  0x1d   : > { %v3129_v31 = vld [vmem:[%s3090_s13 + $0x30] sm:$0xff]  ;;  %v534_v32 = vpack.c.bf16 %v3119_v26, %v504_v25  ;;  %v3133_v33 = vsel %vm501_vm2, %v520_v23, %v521_v24  ;;  %v872_v34 = vpack.c.bf16 %v3123_v29, %v3094_v9  ;;  %v508_v38 = vrot.slane %v3126_v30, 1  ;;  %v341_v42 = vld [vmem:[%s3090_s13 + $0x58] sm:$0x1]  ;;  %v3179_v57 = vld [vmem:[%s3090_s13 + $0x40] sm:$0xff] }
  0x1e   : > { %v3139_v36 = vsel %vm501_vm2, %v523_v27, %v524_v28  ;;  %v385_v37 = vpack.c.bf16 %v3129_v31, %v3126_v30  ;;  %v509_v40 = vrot.slane %v335_v35, 1  ;;  %v3148_v41 = vld [vmem:[%s3090_s13 + $0x50] sm:$0xff]  ;;  %v337_v43 = vld [vmem:[%s3090_s13 + $0x38] sm:$0x1]  ;;  %v518_v48 = vrot.slane %v341_v42, 1  ;;  %v2274_v58 = vld [vmem:[%s3090_s13 + $0x120] sm:$0xff] }
  0x1f   : > { %2308 = vmatmul.msk.bf16.vlgmr.msra.gmra.mxu2 %vm395_vm1, %v534_v32  ;;  %v537_v39 = vpack.c.bf16 %v3139_v36, %v3133_v33  ;;  %v517_v45 = vrot.slane %v3148_v41, 1  ;;  %v511_v51 = vrot.slane %v3129_v31, 1  ;;  %v512_v52 = vrot.slane %v337_v43, 1  ;;  %v2276_v59 = vld [vmem:[%s3090_s13 + $0x130] sm:$0xff]  ;;  %v339_v63 = vld [vmem:[%s3090_s13 + $0x48] sm:$0x1] }
  0x20   : > { %2304 = vmatmul.msk.bf16.vlgmr.msra.gmra.mxu1 %vm395_vm1, %v385_v37  ;;  %v3155_v44 = vsel %vm501_vm2, %v508_v38, %v509_v40  ;;  %v390_v55 = vpack.c.bf16 %v3165_v50, %v3123_v29  ;;  %v386_v61 = vpack.c.bf16 %v3148_v41, %v3179_v57  ;;  %v592_v62 = vpack.c.bf16 %v2276_v59, %v2274_v58  ;;  %v3193_v0 = vld [vmem:[%s3090_s13 + $0xd0] sm:$0xff]  ;;  %v3196_v1 = vld [vmem:[%s3090_s13 + $0xe0] sm:$0xff]  ;;  %v2317_v11 = vld [vmem:[%s3952_s1 + $0x8] sm:$0x3] }
  0x21   : > { %2311 = vmatmul.msk.bf16.vlgmr.msra.gmra.mxu3 %vm395_vm1, %v537_v39  ;;  %v936_v47 = vpack.c.bf16 %v3155_v44, %v3119_v26  ;;  %v3169_v53 = vsel %vm501_vm2, %v517_v45, %v518_v48  ;;  %v3176_v56 = vsel %vm501_vm2, %v511_v51, %v512_v52  ;;  %v514_v2 = vrot.slane %v3179_v57, 1  ;;  %v2278_v6 = vld [vmem:[%s3090_s13 + $0x140] sm:$0xff]  ;;  %v2280_v7 = vld [vmem:[%s3090_s13 + $0x150] sm:$0xff]  ;;  %v2327_v16 = vld [vmem:[%s3952_s1 + $0xc] sm:$0x3] }
  0x22   : > { %900 = vmatpush.bf16.msra.mxu3 %v891_v49  ;;  %v938_v54 = vpack.c.bf16 %v3133_v33, %v3169_v53  ;;  %v535_v60 = vpack.c.bf16 %v3176_v56, %v3155_v44  ;;  %v515_v3 = vrot.slane %v339_v63, 1  ;;  %v391_v4 = vpack.c.bf16 %v3196_v1, %v3193_v0  ;;  %v2322_v17 = vld [vmem:[%s3952_s1 + $0xa] sm:$0x3]  ;;  %v3227_v22 = vld [vmem:[%s3090_s13 + $0xf0] sm:$0xff]  ;;  %v3230_v23 = vld [vmem:[%s3090_s13 + $0x100] sm:$0xff] }
  0x23   : > { %v387_v12 = vpack.c.bf16 %v3113_v21, %v3108_v19  ;;  %v669_v14 = vsel %vm408_vm0, %v2317_v11, 0  ;;  %v593_v15 = vpack.c.bf16 %v2280_v7, %v2278_v6  ;;  %v833_v18 = vsel %vm408_vm0, %v2327_v16, 0  ;;  %v2282_v28 = vld [vmem:[%s3090_s13 + $0x160] sm:$0xff]  ;;  %v2284_v32 = vld [vmem:[%s3090_s13 + $0x170] sm:$0xff]  ;;  %v2275_v35 = vld [vmem:[%s3090_s13 + $0x128] sm:$0x1] }
  0x24   : > { %v3202_v5 = vsel %vm501_vm2, %v514_v2, %v515_v3  ;;  %678 = vmatpush.bf16.msra.mxu0 %v669_v14  ;;  %v775_v20 = vsel %vm408_vm0, %v2322_v17, 0  ;;  %842 = vmatpush.bf16.msrb.mxu2 %v833_v18  ;;  %v392_v24 = vpack.c.bf16 %v3230_v23, %v3227_v22  ;;  %v724_v25 = vrot.slane %v2274_v58, 1  ;;  %v2277_v37 = vld [vmem:[%s3090_s13 + $0x138] sm:$0x1]  ;;  %v2337_v39 = vld [vmem:[%s3952_s1 + $0x10] sm:$0x3] }
  0x25   : > { %v536_v8 = vpack.c.bf16 %v3169_v53, %v3202_v5  ;;  %784 = vmatpush.bf16.msrb.mxu1 %v775_v20  ;;  %v727_v27 = vrot.slane %v2276_v59, 1  ;;  %v814_v38 = vpack.c.bf16 %v3126_v30, %v3102_v13  ;;  %v725_v40 = vrot.slane %v2275_v35, 1  ;;  %v2288_v58 = vld [vmem:[%s3090_s13 + $0x190] sm:$0xff]  ;;  %v2279_v59 = vld [vmem:[%s3090_s13 + $0x148] sm:$0x1]  ;;  %v2293_v20 = vld [vmem:[%s3090_s13 + $0x1e0] sm:$0xff] }
  0x26   : > { %v728_v42 = vrot.slane %v2277_v37, 1  ;;  %v955_v43 = vsel %vm408_vm0, %v2337_v39, 0  ;;  %v594_v45 = vpack.c.bf16 %v2284_v32, %v2282_v28  ;;  %v384_v30 = vpack.c.bf16 %v3102_v13, %v3097_v10  ;;  %v2292_v18 = vld [vmem:[%s3090_s13 + $0x1d0] sm:$0xff]  ;;  %v2295_v39 = vld [vmem:[%s3090_s13 + $0x200] sm:$0xff] }
  0x27   : > { %v726_v46 = vsel %vm501_vm2, %v724_v25, %v725_v40  ;;  %v730_v51 = vrot.slane %v2278_v6, 1  ;;  %v733_v52 = vrot.slane %v2280_v7, 1  ;;  %v873_v10 = vpack.c.bf16 %v3193_v0, %v3165_v50  ;;  %v2283_v0 = vld [vmem:[%s3090_s13 + $0x168] sm:$0x1] }
  0x28   : > { %v729_v48 = vsel %vm501_vm2, %v727_v27, %v728_v42  ;;  %v736_v7 = vrot.slane %v2282_v28, 1  ;;  %v739_v50 = vrot.slane %v2284_v32, 1  ;;  %v816_v11 = vpack.c.bf16 %v3108_v19, %v3148_v41  ;;  %v346_v41 = vld [vmem:[%s3090_s13 + $0x80] sm:$0xff]  ;;  %v2287_v27 = vld [vmem:[%s3090_s13 + $0x188] sm:$0x1]  ;;  %v2296_v42 = vld [vmem:[%s3090_s13 + $0x210] sm:$0xff] }
  0x29   : > { %v756_v49 = vpack.c.bf16 %v729_v48, %v726_v46  ;;  %v651_v19 = vpack.c.bf16 %v2293_v20, %v2292_v18  ;;  %v745_v25 = vrot.slane %v2288_v58, 1  ;;  %v2289_v28 = vld [vmem:[%s3090_s13 + $0x198] sm:$0x1]  ;;  %v817_v32 = vpack.c.bf16 %v346_v41, %v3113_v21  ;;  %v2273_v48 = vld [vmem:[%s3090_s13 + $0x110] sm:$0xff] }
  0x2a   : > { %v743_v35 = vrot.slane %v2287_v27, 1  ;;  %v746_v9 = vrot.slane %v2289_v28, 1  ;;  %v874_v21 = vpack.c.bf16 %v3227_v22, %v3196_v1  ;;  %v937_v26 = vpack.c.bf16 %v3202_v5, %v3176_v56 }
  0x2b   : > { %2300 = vmatmul.msk.bf16.gmra.mxu0 %vm395_vm1, %v390_v55  ;;  %v2286_v55 = vld [vmem:[%s3090_s13 + $0x180] sm:$0xff] }
  0x2c   : > { %v595_v13 = vpack.c.bf16 %v2288_v58, %v2286_v55 }
  0x2f   : > { %2309 = vmatmul.msk.bf16.gmra.mxu2 %vm395_vm1, %v535_v60  ;;  %v2281_v60 = vld [vmem:[%s3090_s13 + $0x158] sm:$0x1] }
  0x30   : > { %2305 = vmatmul.msk.bf16.gmra.mxu1 %vm395_vm1, %v386_v61  ;;  %v815_v61 = vpack.c.bf16 %v3179_v57, %v3129_v31  ;;  %v734_v63 = vrot.slane %v2281_v60, 1  ;;  %v2290_v31 = vld [vmem:[%s3090_s13 + $0x1b0] sm:$0xff]  ;;  %v2291_v57 = vld [vmem:[%s3090_s13 + $0x1c0] sm:$0xff] }
  0x31   : > { %2313 = vmatmul.msk.bf16.vlgmr.msrb.gmra.mxu3 %vm395_vm1, %v592_v62  ;;  %v731_v62 = vrot.slane %v2279_v59, 1  ;;  %v650_v6 = vpack.c.bf16 %v2291_v57, %v2290_v31 }
  0x32   : > { %2863 = vmatpush.bf16.msrb.mxu3 %v955_v43  ;;  %v735_v3 = vsel %vm501_vm2, %v733_v52, %v734_v63 }
  0x33   : > { %v732_v2 = vsel %vm501_vm2, %v730_v51, %v731_v62  ;;  %v347_v62 = vld [vmem:[%s3090_s13 + $0x88] sm:$0x1] }
  0x3b   : > { %2301 = vmatmul.msk.bf16.gmra.mxu0 %vm395_vm1, %v391_v4  ;;  %v757_v4 = vpack.c.bf16 %v735_v3, %v732_v2 }
  0x3f   : > { %2310 = vmatmul.msk.bf16.gmra.mxu2 %vm395_vm1, %v536_v8  ;;  %v2285_v8 = vld [vmem:[%s3090_s13 + $0x178] sm:$0x1] }
  0x40   : > { %2306 = vmatmul.msk.bf16.gmra.mxu1 %vm395_vm1, %v387_v12  ;;  %v737_v12 = vrot.slane %v2283_v0, 1  ;;  %v740_v14 = vrot.slane %v2285_v8, 1 }
  0x41   : > { %2314 = vmatmul.msk.bf16.gmra.mxu3 %vm395_vm1, %v593_v15 }
  0x42   : > { %v738_v15 = vsel %vm501_vm2, %v736_v7, %v737_v12  ;;  %v741_v16 = vsel %vm501_vm2, %v739_v50, %v740_v14 }
  0x43   : > { %v758_v17 = vpack.c.bf16 %v741_v16, %v738_v15 }
  0x4b   : > { %2302 = vmatmul.msk.bf16.gmra.mxu0 %vm395_vm1, %v392_v24  ;;  %v742_v24 = vrot.slane %v2286_v55, 1 }
  0x4d   : > { %v744_v29 = vsel %vm501_vm2, %v742_v24, %v743_v35  ;;  %v2799_v24 = vld [vmem:[%s3954_s3 + $0x78] sm:$0xff]  ;;  %v2798_v35 = vld [vmem:[%s3954_s3 + $0x70] sm:$0xff] }
  0x4e   : > { %1148 = vmatpush.bf16.msra.mxu1 %v2799_v24 }
  0x4f   : > { %2328 = vmatmul.msk.bf16.vlgmr.msrb.gmra.mxu2 %vm395_vm1, %v814_v38  ;;  %v2294_v38 = vld [vmem:[%s3090_s13 + $0x1f0] sm:$0xff] }
  0x50   : > { %2323 = vmatmul.msk.bf16.vlgmr.msrb.gmra.mxu1 %vm395_vm1, %v756_v49  ;;  %v652_v40 = vpack.c.bf16 %v2295_v39, %v2294_v38  ;;  %v875_v49 = vpack.c.bf16 %v2273_v48, %v3230_v23 }
  0x51   : > { %2315 = vmatmul.msk.bf16.gmra.mxu3 %vm395_vm1, %v594_v45 }
  0x52   : > { %1149 = vmatpush.bf16.msra.mxu1 %v2798_v35  ;;  %v2810_v35 = vld [vmem:[%s3954_s3 + $0xd0] sm:$0xff] }
  0x5b   : > { %2303 = vmatmul.msk.bf16.vlgmr.msrb.gmra.mxu0 %vm395_vm1, %v384_v30 }
  0x5c   : > { %964 = vmatpush.bf16.msrb.mxu0 %v955_v43  ;;  %v2297_v43 = vld [vmem:[%s3090_s13 + $0x220] sm:$0xff]  ;;  %s2260_s13 = sshll.u32 %s314_s12, 6 }
  0x5d   : > { %v653_v45 = vpack.c.bf16 %v2297_v43, %v2296_v42  ;;  %v2796_v42 = vld [vmem:[%s3954_s3 + $0x60] sm:$0xff]  ;;  %s3873_s17 = scalar_lea.vmem [#allocation3], %s2260_s13  ;;  %s2930_s13 = scalar_lea.hbm %s3959_s8, 128 }
  0x5e   : > { %s2179_s22 = sshll.u32 %s3873_s17, 4  ;;  %s2180_s22 = int_to_ptr.vmem [resolvable:$true] %s2179_s22 }
  0x5f   : > { %2329 = vmatmul.msk.bf16.gmra.mxu2 %vm395_vm1, %v815_v61 }
  0x60   : > { %2324 = vmatmul.msk.bf16.gmra.mxu1 %vm395_vm1, %v757_v4 }
  0x61   : > { %2316 = vmatmul.msk.bf16.gmra.mxu3 %vm395_vm1, %v595_v13  ;;  %v933_v13 = vrot.slane %v347_v62, 1  ;;  %v2815_v62 = vld [vmem:[%s3954_s3 + $0xf8] sm:$0xff] }
  0x6b   : > { %2318 = vmatmul.msk.bf16.vlgmr.msra.gmra.mxu0 %vm395_vm1, %v650_v6 }
  0x6c   : > { %1445 = vmatpush.bf16.msra.mxu0 %v2815_v62 }
  0x6f   : > { %2330 = vmatmul.msk.bf16.gmra.mxu2 %vm395_vm1, %v816_v11 }
  0x70   : > { %2325 = vmatmul.msk.bf16.gmra.mxu1 %vm395_vm1, %v758_v17 }
  0x71   : > { %2333 = vmatmul.msk.bf16.vlgmr.msra.gmra.mxu3 %vm395_vm1, %v872_v34  ;;  %v747_v34 = vsel %vm501_vm2, %v745_v25, %v746_v9 }
  0x72   : > { %v759_v37 = vpack.c.bf16 %v747_v34, %v744_v29  ;;  %v2789_v34 = vld [vmem:[%s3954_s3 + $0x28] sm:$0xff] }
  0x7b   : > { %2319 = vmatmul.msk.bf16.gmra.mxu0 %vm395_vm1, %v651_v19 }
  0x7f   : > { %2331 = vmatmul.msk.bf16.gmra.mxu2 %vm395_vm1, %v817_v32  ;;  %v2790_v32 = vld [vmem:[%s3954_s3 + $0x30] sm:$0xff] }
  0x80   : > { %2326 = vmatmul.msk.bf16.gmra.mxu1 %vm395_vm1, %v759_v37  ;;  %v2797_v37 = vld [vmem:[%s3954_s3 + $0x68] sm:$0xff] }
  0x81   : > { %2334 = vmatmul.msk.bf16.gmra.mxu3 %vm395_vm1, %v873_v10  ;;  %v932_v10 = vrot.slane %v346_v41, 1  ;;  %v2791_v41 = vld [vmem:[%s3954_s3 + $0x38] sm:$0xff]  ;;  %1150 = vmatpush.bf16.msra.mxu1 %v2797_v37 }
  0x82   : > { %1225 = vmatpush.bf16.msra.mxu2 %v2791_v41 }
  0x85   : > { %1151 = vmatpush.bf16.msra.mxu1 %v2796_v42  ;;  %v2809_v42 = vld [vmem:[%s3954_s3 + $0xc8] sm:$0xff] }
  0x86   : > { %1226 = vmatpush.bf16.msra.mxu2 %v2790_v32  ;;  %v2800_v32 = vld [vmem:[%s3954_s3 + $0x80] sm:$0xff] }
  0x8a   : > { %1227 = vmatpush.bf16.msra.mxu2 %v2789_v34 }
  0x8b   : > { %2320 = vmatmul.msk.bf16.gmra.mxu0 %vm395_vm1, %v652_v40 }
  0x91   : > { %2335 = vmatmul.msk.bf16.gmra.mxu3 %vm395_vm1, %v874_v21  ;;  %v2788_v21 = vld [vmem:[%s3954_s3 + $0x20] sm:$0xff] }
  0x92   : > { %1228 = vmatpush.bf16.msra.mxu2 %v2788_v21 }
  0x98   : > { %v421_v46 = vpop.f32.mrf.mxu0 }
  0x9b   : > { %2321 = vmatmul.msk.bf16.gmra.mxu0 %vm395_vm1, %v653_v45 }
  0x9d   : > { %v470_v30 = vpop.f32.mrf.mxu1 }
  0xa0   : > { %v3304_v51 = vpop.f32.mrf.mxu0 }
  0xa1   : > { %2336 = vmatmul.msk.bf16.gmra.mxu3 %vm395_vm1, %v875_v49 }
  0xa2   : > { %v564_v55 = vpop.f32.mrf.mxu2 }
  0xa4   : > { %v579_v52 = vpop.f32.mrf.mxu3 }
  0xa5   : > { %v3307_v22 = vpop.f32.mrf.mxu1 }
  0xa8   : > { %v426_v1 = vpop.f32.mrf.mxu0 }
  0xa9   : > { %v471_v58 = vadd.f32 %v470_v30, %v426_v1  ;;  %v2787_v30 = vld [vmem:[%s3954_s3 + $0x18] sm:$0xff] }
  0xaa   : > { %v3317_v23 = vpop.f32.mrf.mxu2  ;;  %1229 = vmatpush.bf16.msra.mxu2 %v2787_v30 }
  0xab   : > { %2338 = vmatmul.msk.bf16.vlgmr.msrb.gmra.mxu0 %vm395_vm1, %v936_v47  ;;  %v934_v47 = vsel %vm501_vm2, %v932_v10, %v933_v13  ;;  %v2786_v10 = vld [vmem:[%s3954_s3 + $0x10] sm:$0xff] }
  0xac   : > { %v3313_v59 = vpop.f32.mrf.mxu3  ;;  %v939_v33 = vpack.c.bf16 %v934_v47, %v3139_v36  ;;  %v2794_v13 = vld [vmem:[%s3954_s3 + $0x50] sm:$0xff] }
  0xad   : > { %v475_v61 = vpop.f32.mrf.mxu1  ;;  %v2814_v47 = vld [vmem:[%s3954_s3 + $0xf0] sm:$0xff] }
  0xae   : > { %1230 = vmatpush.bf16.msra.mxu2 %v2786_v10  ;;  %1446 = vmatpush.bf16.msra.mxu0 %v2814_v47 }
  0xb0   : > { %v3315_v60 = vpop.f32.mrf.mxu0 }
  0xb1   : > { %2340 = vmatmul.msk.bf16.vlgmr.msrb.gmra.mxu3 %vm395_vm1, %v938_v54 }
  0xb2   : > { %v569_v2 = vpop.f32.mrf.mxu2 }
  0xb3   : > { %v586_v54 = vadd.f32 %v569_v2, %v471_v58 }
  0xb4   : > { %v622_v63 = vpop.f32.mrf.mxu3 }
  0xb5   : > { %v3330_v4 = vpop.f32.mrf.mxu1 }
  0xb8   : > { %v431_v44 = vpop.f32.mrf.mxu0 }
  0xb9   : > { %v476_v36 = vadd.f32 %v475_v61, %v431_v44  ;;  %v2805_v61 = vld [vmem:[%s3954_s3 + $0xa8] sm:$0xff] }
  0xba   : > { %v3338_v56 = vpop.f32.mrf.mxu2 }
  0xbb   : > { %2339 = vmatmul.msk.bf16.gmra.mxu0 %vm395_vm1, %v937_v26  ;;  %v2804_v26 = vld [vmem:[%s3954_s3 + $0xa0] sm:$0xff] }
  0xbc   : > { %v3328_v3 = vpop.f32.mrf.mxu3 }
  0xbd   : > { %v480_v5 = vpop.f32.mrf.mxu1 }
  0xc0   : > { %v3333_v53 = vpop.f32.mrf.mxu0 }
  0xc1   : > { %2341 = vmatmul.msk.bf16.gmra.mxu3 %vm395_vm1, %v939_v33 }
  0xc2   : > { %v574_v8 = vpop.f32.mrf.mxu2 }
  0xc3   : > { %v588_v12 = vadd.f32 %v574_v8, %v476_v36  ;;  %v2802_v8 = vld [vmem:[%s3954_s3 + $0x90] sm:$0xff]  ;;  %v2812_v36 = vld [vmem:[%s3954_s3 + $0xe0] sm:$0xff] }
  0xc4   : > { %v627_v31 = vpop.f32.mrf.mxu3 }
  0xc5   : > { %v3336_v57 = vadd.f32 %v627_v31, %v586_v54  ;;  %v3378_v39 = vpop.f32.mrf.mxu1  ;;  %v2974_v54 = vmov 0.0   ;;  %v2803_v31 = vld [vmem:[%s3954_s3 + $0x98] sm:$0xff] }
  0xc6   : > { %1016 = vst [vmem:[#allocation2 + $0x10] sm:$0xff] %v2974_v54 }
  0xc7   : > { %1017 = vst [vmem:[#allocation2 + $0x18] sm:$0x3] %v2974_v54 }
  0xc8   : > { %v436_v6 = vpop.f32.mrf.mxu0  ;;  %1014 = vst [vmem:[#allocation2] sm:$0xff] %v2974_v54 }
  0xc9   : > { %v481_v7 = vadd.f32 %v480_v5, %v436_v6  ;;  %v2813_v5 = vld [vmem:[%s3954_s3 + $0xe8] sm:$0xff]  ;;  %1015 = vst [vmem:[#allocation2 + $0x8] sm:$0x3] %v2974_v54 }
  0xca   : > { %v3388_v43 = vpop.f32.mrf.mxu2  ;;  %v2793_v6 = vld [vmem:[%s3954_s3 + $0x48] sm:$0xff]  ;;  %1447 = vmatpush.bf16.msra.mxu0 %v2813_v5  ;;  %1018 = vst [vmem:[#allocation2 + $0x20] sm:$0xff] %v2974_v54 }
  0xcb   : > { %v590_v50 = vadd.f32 %v579_v52, %v481_v7  ;;  %v2795_v52 = vld [vmem:[%s3954_s3 + $0x58] sm:$0xff]  ;;  %1019 = vst [vmem:[#allocation2 + $0x28] sm:$0x3] %v2974_v54 }
  0xcc   : > { %v3340_v0 = vpop.f32.mrf.mxu3  ;;  %1152 = vmatpush.bf16.msra.mxu1 %v2795_v52  ;;  %1020 = vst [vmem:[#allocation2 + $0x30] sm:$0xff] %v2974_v54 }
  0xcd   : > { %v3395_v48 = vpop.f32.mrf.mxu1  ;;  %1021 = vst [vmem:[#allocation2 + $0x38] sm:$0x3] %v2974_v54 }
  0xce   : > { %1022 = vst [vmem:[#allocation2 + $0x40] sm:$0xff] %v2974_v54  ;;  %1448 = vmatpush.bf16.msra.mxu0 %v2812_v36 }
  0xcf   : > { %1023 = vst [vmem:[#allocation2 + $0x48] sm:$0x3] %v2974_v54 }
  0xd0   : > { %v3342_v11 = vpop.f32.mrf.mxu0  ;;  %1153 = vmatpush.bf16.msra.mxu1 %v2794_v13  ;;  %1024 = vst [vmem:[#allocation2 + $0x50] sm:$0xff] %v2974_v54 }
  0xd1   : > { %1025 = vst [vmem:[#allocation2 + $0x58] sm:$0x3] %v2974_v54 }
  0xd2   : > { %v3408_v1 = vpop.f32.mrf.mxu2  ;;  %1026 = vst [vmem:[#allocation2 + $0x60] sm:$0xff] %v2974_v54 }
  0xd3   : > { %1027 = vst [vmem:[#allocation2 + $0x68] sm:$0x3] %v2974_v54 }
  0xd4   : > { %v632_v14 = vpop.f32.mrf.mxu3  ;;  %1154 = vmatpush.bf16.msra.mxu1 %v2793_v6  ;;  %1028 = vst [vmem:[#allocation2 + $0x70] sm:$0xff] %v2974_v54 }
  0xd5   : > { %v3344_v15 = vadd.f32 %v632_v14, %v588_v12  ;;  %v3429_v44 = vpop.f32.mrf.mxu1  ;;  %1029 = vst [vmem:[#allocation2 + $0x78] sm:$0x3] %v2974_v54 }
  0xd6   : > { %1030 = vst [vmem:[#allocation2 + $0x80] sm:$0xff] %v2974_v54 }
  0xd7   : > { %1031 = vst [vmem:[#allocation2 + $0x88] sm:$0x3] %v2974_v54 }
  0xd8   : > { %v465_v16 = vpop.f32.mrf.mxu0  ;;  %1032 = vst [vmem:[#allocation2 + $0x90] sm:$0xff] %v2974_v54 }
  0xd9   : > { %v466_v17 = vadd.f32 %v465_v16, %v421_v46  ;;  %v2807_v46 = vld [vmem:[%s3954_s3 + $0xb8] sm:$0xff]  ;;  %v2792_v16 = vld [vmem:[%s3954_s3 + $0x40] sm:$0xff]  ;;  %1033 = vst [vmem:[#allocation2 + $0x98] sm:$0x3] %v2974_v54 }
  0xda   : > { %1331 = vmatpush.bf16.msra.mxu3 %v2807_v46  ;;  %v3436_v33 = vpop.f32.mrf.mxu2  ;;  %1155 = vmatpush.bf16.msra.mxu1 %v2792_v16  ;;  %v1071_v16 = vld [vmem:[#allocation2 + $0x1] sm:$0xff] }
  0xdb   : > { %v584_v18 = vadd.f32 %v564_v55, %v466_v17  ;;  %v2806_v55 = vld [vmem:[%s3954_s3 + $0xb0] sm:$0xff]  ;;  %v2801_v17 = vld [vmem:[%s3954_s3 + $0x88] sm:$0xff] }
  0xdc   : > { %v3346_v20 = vpop.f32.mrf.mxu3 }
  0xdd   : > { %v3348_v19 = vadd.f32 %v622_v63, %v584_v18  ;;  %v3464_v12 = vpop.f32.mrf.mxu1  ;;  %v2811_v18 = vld [vmem:[%s3954_s3 + $0xd8] sm:$0xff] }
  0xde   : > { %1332 = vmatpush.bf16.msra.mxu3 %v2806_v55  ;;  %1449 = vmatpush.bf16.msra.mxu0 %v2811_v18 }
  0xe0   : > { %v3356_v25 = vpop.f32.mrf.mxu0 }
  0xe1   : > { %v468_v21 = vadd.f32 %v3356_v25, %v3304_v51  ;;  %v2808_v25 = vld [vmem:[%s3954_s3 + $0xc0] sm:$0xff] }
  0xe2   : > { %1333 = vmatpush.bf16.msra.mxu3 %v2805_v61  ;;  %v3481_v41 = vpop.f32.mrf.mxu2  ;;  %1450 = vmatpush.bf16.msra.mxu0 %v2810_v35 }
  0xe3   : > { %v585_v51 = vadd.f32 %v3317_v23, %v468_v21 }
  0xe4   : > { %v637_v27 = vpop.f32.mrf.mxu3 }
  0xe5   : > { %v3358_v28 = vadd.f32 %v637_v27, %v590_v50  ;;  %v2785_v50 = vld [vmem:[%s3954_s3 + $0x8] sm:$0xff]  ;;  %v2784_v27 = vld [vmem:[%s3954_s3] sm:$0xff]  ;;  %v3502_v37 = vpop.f32.mrf.mxu1  ;;  %v643_v62 = vadd.f32 %v3328_v3, %v585_v51 }
  0xe6   : > { %1334 = vmatpush.bf16.msra.mxu3 %v2804_v26  ;;  %1231 = vmatpush.bf16.msra.mxu2 %v2785_v50  ;;  %v3541_v3 = vld [vmem:[%s3953_s2] ss:$0 sm:$0xff]  ;;  %v1254_v51 = vld [vmem:[#allocation2 + $0x2] sm:$0xff] }
  0xe7   : > { %1451 = vmatpush.bf16.msra.mxu0 %v2809_v42 }
  0xe8   : > { %v3366_v9 = vpop.f32.mrf.mxu0 }
  0xe9   : > { %v700_v30 = vadd.f32 %v3366_v9, %v3348_v19  ;;  %v2831_v19 = vld [vmem:[%s3954_s3 + $0x178] sm:$0xff] }
  0xea   : > { %1335 = vmatpush.bf16.msra.mxu3 %v2803_v31  ;;  %1232 = vmatpush.bf16.msra.mxu2 %v2784_v27  ;;  %v3517_v52 = vpop.f32.mrf.mxu2  ;;  %v2823_v9 = vld [vmem:[%s3954_s3 + $0x138] sm:$0xff] }
  0xeb   : > { %v806_v61 = vadd.f32 %v3395_v48, %v700_v30  ;;  %1452 = vmatpush.bf16.msra.mxu0 %v2808_v25  ;;  %1559 = vmatpush.bf16.msrb.mxu1 %v2823_v9  ;;  %v2829_v30 = vld [vmem:[%s3954_s3 + $0x168] sm:$0xff] }
  0xec   : > { %v3368_v29 = vpop.f32.mrf.mxu3 }
  0xed   : > { %v796_v23 = vpop.f32.mrf.mxu1  ;;  %v864_v13 = vadd.f32 %v3408_v1, %v806_v61 }
  0xee   : > { %1336 = vmatpush.bf16.msra.mxu3 %v2802_v8  ;;  %1673 = vmatpush.bf16.msrb.mxu2 %v2831_v19  ;;  %v2822_v8 = vld [vmem:[%s3954_s3 + $0x130] sm:$0xff] }
  0xef   : > { %1560 = vmatpush.bf16.msrb.mxu1 %v2822_v8 }
  0xf0   : > { %v3376_v38 = vpop.f32.mrf.mxu0 }
  0xf1   : > { %v701_v26 = vadd.f32 %v3376_v38, %v643_v62  ;;  %v478_v38 = vadd.f32 %v3330_v4, %v3333_v53  ;;  %v2828_v62 = vld [vmem:[%s3954_s3 + $0x160] sm:$0xff] }
  0xf2   : > { %1337 = vmatpush.bf16.msra.mxu3 %v2801_v17  ;;  %v854_v47 = vpop.f32.mrf.mxu2  ;;  %v473_v17 = vadd.f32 %v3307_v22, %v3315_v60 }
  0xf3   : > { %v807_v5 = vadd.f32 %v3429_v44, %v701_v26  ;;  %v589_v36 = vadd.f32 %v3388_v43, %v478_v38 }
  0xf4   : > { %v3380_v40 = vpop.f32.mrf.mxu3 }
  0xf5   : > { %v922_v48 = vadd.f32 %v3380_v40, %v864_v13  ;;  %v2830_v40 = vld [vmem:[%s3954_s3 + $0x170] sm:$0xff]  ;;  %v798_v18 = vpop.f32.mrf.mxu1  ;;  %v647_v27 = vadd.f32 %v3346_v20, %v589_v36 }
  0xf6   : > { %1338 = vmatpush.bf16.msra.mxu3 %v2800_v32  ;;  %1674 = vmatpush.bf16.msrb.mxu2 %v2830_v40  ;;  %v587_v32 = vadd.f32 %v3338_v56, %v473_v17  ;;  %v2821_v56 = vld [vmem:[%s3954_s3 + $0x128] sm:$0xff] }
  0xf7   : > { %1561 = vmatpush.bf16.msrb.mxu1 %v2821_v56 }
  0xf8   : > { %v3390_v45 = vpop.f32.mrf.mxu0  ;;  %v645_v22 = vadd.f32 %v3340_v0, %v587_v32  ;;  %v2826_v32 = vld [vmem:[%s3954_s3 + $0x150] sm:$0xff] }
  0xf9   : > { %v702_v4 = vadd.f32 %v3390_v45, %v3336_v57 }
  0xfa   : > { %v856_v60 = vpop.f32.mrf.mxu2  ;;  %1675 = vmatpush.bf16.msrb.mxu2 %v2829_v30 }
  0xfb   : > { %v808_v45 = vadd.f32 %v3464_v12, %v702_v4 }
  0xfc   : > { %v3397_v49 = vpop.f32.mrf.mxu3 }
  0xfd   : > { %v866_v25 = vadd.f32 %v3481_v41, %v808_v45  ;;  %v2847_v45 = vld [vmem:[%s3954_s3 + $0x1f8] sm:$0xff] }
  0xfe   : > { %1676 = vmatpush.bf16.msrb.mxu2 %v2828_v62  ;;  %1902 = vmatpush.bf16.msrb.mxu0 %v2847_v45 }
 0x100   : > { %v3410_v58 = vpop.f32.mrf.mxu0 }
 0x101   : > { %v703_v12 = vadd.f32 %v3410_v58, %v645_v22  ;;  %v2820_v58 = vld [vmem:[%s3954_s3 + $0x120] sm:$0xff] }
 0x102   : > { %1562 = vmatpush.bf16.msrb.mxu1 %v2820_v58  ;;  %v859_v8 = vpop.f32.mrf.mxu2 }
 0x104   : > { %v3418_v63 = vpop.f32.mrf.mxu3 }
 0x108   : > { %v3434_v2 = vpop.f32.mrf.mxu0 }
 0x109   : > { %v704_v6 = vadd.f32 %v3434_v2, %v3344_v15  ;;  %v865_v15 = vadd.f32 %v3436_v33, %v807_v5 }
 0x10b   : > { %v810_v53 = vadd.f32 %v796_v23, %v704_v6  ;;  %v923_v43 = vadd.f32 %v3397_v49, %v865_v15  ;;  %v924_v23 = vadd.f32 %v3418_v63, %v866_v25 }
 0x10c   : > { %v3449_v7 = vpop.f32.mrf.mxu3 }
 0x10d   : > { %v868_v35 = vadd.f32 %v854_v47, %v810_v53  ;;  %v809_v47 = vadd.f32 %v3502_v37, %v703_v12  ;;  %v2838_v37 = vld [vmem:[%s3954_s3 + $0x1b0] sm:$0xff]  ;;  %v861_v12 = vpop.f32.mrf.mxu2 }
 0x10f   : > { %v867_v40 = vadd.f32 %v3517_v52, %v809_v47 }
 0x110   : > { %v3466_v14 = vpop.f32.mrf.mxu0 }
 0x111   : > { %v705_v21 = vadd.f32 %v3466_v14, %v647_v27  ;;  %v925_v53 = vadd.f32 %v3449_v7, %v867_v40  ;;  %v2832_v40 = vld [vmem:[%s3954_s3 + $0x180] sm:$0xff] }
 0x113   : > { %v811_v0 = vadd.f32 %v798_v18, %v705_v21 }
 0x114   : > { %v3483_v24 = vpop.f32.mrf.mxu3 }
 0x115   : > { %v926_v20 = vadd.f32 %v3483_v24, %v868_v35  ;;  %v869_v6 = vadd.f32 %v856_v60, %v811_v0 }
 0x118   : > { %v3498_v34 = vpop.f32.mrf.mxu0 }
 0x11c   : > { %v3511_v46 = vpop.f32.mrf.mxu3 }
 0x120   : > { %v3523_v55 = vpop.f32.mrf.mxu0 }
 0x124   : > { %v3533_v10 = vpop.f32.mrf.mxu3 }
 0x128   : > { %v966_v31 = vpop.f32.mrf.mxu0 }
 0x129   : > { %v986_v50 = vadd.f32 %v966_v31, %v922_v48  ;;  %v483_v48 = vadd.f32 %v3378_v39, %v3342_v11  ;;  %v801_v31 = vpop.f32.mrf.mxu1  ;;  %v2827_v11 = vld [vmem:[%s3954_s3 + $0x158] sm:$0xff] }
 0x12a   : > { %v2819_v39 = vld [vmem:[%s3954_s3 + $0x118] sm:$0xff]  ;;  %1677 = vmatpush.bf16.msrb.mxu2 %v2827_v11  ;;  %v2816_v11 = vld [vmem:[%s3954_s3 + $0x100] sm:$0xff] }
 0x12b   : > { %v998_v1 = vadd.f32 %v3541_v3, %v986_v50  ;;  %v706_v50 = vadd.f32 %v3498_v34, %v3358_v28  ;;  %v927_v28 = vadd.f32 %v3511_v46, %v869_v6  ;;  %1563 = vmatpush.bf16.msrb.mxu1 %v2819_v39 }
 0x12c   : > { %v3556_v44 = vpop.f32.mrf.mxu3 }
 0x12d   : > { %v3561_v2 = vmax.f32 %v998_v1, 0.0  ;;  %v591_v1 = vadd.f32 %v3313_v59, %v483_v48 }
 0x12e   : > { %1678 = vmatpush.bf16.msrb.mxu2 %v2826_v32  ;;  %v2854_v32 = vld [vmem:[%s3954_s3 + $0x230] sm:$0xff] }
 0x12f   : > { %1035 = vst [vmem:[#allocation2 + $0x11] sm:$0xff] %v3561_v2  ;;  %v1079_v33 = vpack.c.bf16 %v3561_v2, %v1071_v16  ;;  %v812_v16 = vadd.f32 %v801_v31, %v706_v50  ;;  %v649_v46 = vadd.f32 %v3368_v29, %v591_v1  ;;  %v2834_v31 = vld [vmem:[%s3954_s3 + $0x190] sm:$0xff] }
 0x130   : > { %v968_v57 = vpop.f32.mrf.mxu0 }
 0x131   : > { %v987_v42 = vadd.f32 %v968_v57, %v923_v43  ;;  %1156 = vmatmul.bf16.vlgmr.msra.gmra.mxu1 %v1079_v33  ;;  %v870_v43 = vadd.f32 %v859_v8, %v812_v16  ;;  %v707_v33 = vadd.f32 %v3523_v55, %v649_v46  ;;  %v2837_v57 = vld [vmem:[%s3954_s3 + $0x1a8] sm:$0xff]  ;;  %v803_v35 = vpop.f32.mrf.mxu1  ;;  %v2818_v55 = vld [vmem:[%s3954_s3 + $0x110] sm:$0xff] }
 0x132   : > { %1564 = vmatpush.bf16.msrb.mxu1 %v2818_v55  ;;  %v2842_v8 = vld [vmem:[%s3954_s3 + $0x1d0] sm:$0xff] }
 0x133   : > { %v999_v49 = vadd.f32 %v3541_v3, %v987_v42  ;;  %v928_v21 = vadd.f32 %v3533_v10, %v870_v43  ;;  %v2846_v10 = vld [vmem:[%s3954_s3 + $0x1f0] sm:$0xff]  ;;  %v2840_v43 = vld [vmem:[%s3954_s3 + $0x1c0] sm:$0xff] }
 0x134   : > { %v976_v14 = vpop.f32.mrf.mxu3  ;;  %1903 = vmatpush.bf16.msrb.mxu0 %v2846_v10 }
 0x135   : > { %v3583_v61 = vmax.f32 %v999_v49, 0.0  ;;  %v990_v24 = vadd.f32 %v976_v14, %v926_v20  ;;  %v2836_v20 = vld [vmem:[%s3954_s3 + $0x1a0] sm:$0xff]  ;;  %v813_v49 = vadd.f32 %v803_v35, %v707_v33 }
 0x136   : > { %v1044_v19 = vld [vmem:[#allocation2 + $0x10] sm:$0xff] }
 0x137   : > { %v3588_v9 = vld [vmem:[#allocation2 + $0x12] sm:$0xff]  ;;  %1036 = vst [vmem:[#allocation2 + $0x21] sm:$0xff] %v3583_v61  ;;  %v1002_v41 = vadd.f32 %v3541_v3, %v990_v24  ;;  %v1051_v13 = vpack.c.bf16 %v1044_v19, %v2974_v54  ;;  %v1490_v10 = vpack.c.bf16 %v3583_v61, %v3561_v2 }
 0x138   : > { %v1262_v26 = vpack.c.bf16 %v3588_v9, %v1254_v51  ;;  %v971_v5 = vpop.f32.mrf.mxu0  ;;  %v2839_v54 = vld [vmem:[%s3954_s3 + $0x1b8] sm:$0xff] }
 0x139   : > { %v3603_v63 = vmax.f32 %v1002_v41, 0.0  ;;  %v988_v38 = vadd.f32 %v971_v5, %v924_v23  ;;  %1233 = vmatmul.bf16.vlgmr.msra.gmra.mxu2 %v1051_v13  ;;  %1788 = vmatpush.bf16.msrb.mxu3 %v2839_v54  ;;  %v2825_v23 = vld [vmem:[%s3954_s3 + $0x148] sm:$0xff]  ;;  %v2835_v41 = vld [vmem:[%s3954_s3 + $0x198] sm:$0xff]  ;;  %v2844_v5 = vld [vmem:[%s3954_s3 + $0x1e0] sm:$0xff] }
 0x13a   : > { %1339 = vmatmul.bf16.vlgmr.msra.gmra.mxu3 %v1262_v26  ;;  %v2845_v13 = vld [vmem:[%s3954_s3 + $0x1e8] sm:$0xff]  ;;  %1679 = vmatpush.bf16.msrb.mxu2 %v2825_v23 }
 0x13b   : > { %1039 = vst [vmem:[#allocation2 + $0x51] sm:$0xff] %v3603_v63  ;;  %v1000_v34 = vadd.f32 %v3541_v3, %v988_v38  ;;  %v2817_v26 = vld [vmem:[%s3954_s3 + $0x108] sm:$0xff]  ;;  %1904 = vmatpush.bf16.msrb.mxu0 %v2845_v13 }
 0x13c   : > { %v978_v36 = vpop.f32.mrf.mxu3  ;;  %1565 = vmatpush.bf16.msrb.mxu1 %v2817_v26  ;;  %v2857_v13 = vld [vmem:[%s3791_s23 + $0x8] sm:$0xff] }
 0x13d   : > { %v3622_v15 = vmax.f32 %v1000_v34, 0.0  ;;  %v991_v4 = vadd.f32 %v978_v36, %v927_v28  ;;  %1789 = vmatpush.bf16.msrb.mxu3 %v2838_v37  ;;  %v2833_v28 = vld [vmem:[%s3954_s3 + $0x188] sm:$0xff]  ;;  %v2843_v34 = vld [vmem:[%s3954_s3 + $0x1d8] sm:$0xff] }
 0x13e   : > { %v1369_v17 = vld [vmem:[#allocation2 + $0x20] sm:$0xff] }
 0x13f   : > { %1037 = vst [vmem:[#allocation2 + $0x31] sm:$0xff] %v3622_v15  ;;  %v1003_v18 = vadd.f32 %v3541_v3, %v991_v4  ;;  %v1376_v59 = vpack.c.bf16 %v1369_v17, %v1044_v19  ;;  %v3630_v52 = vpack.c.bf16 %v3622_v15, %v3583_v61  ;;  %v3661_v51 = vld [vmem:[#allocation2 + $0x22] sm:$0xff]  ;;  %v871_v19 = vadd.f32 %v861_v12, %v813_v49  ;;  %v2851_v12 = vld [vmem:[%s3954_s3 + $0x218] sm:$0xff]  ;;  %v2850_v61 = vld [vmem:[%s3954_s3 + $0x210] sm:$0xff] }
 0x140   : > { %v973_v27 = vpop.f32.mrf.mxu0  ;;  %1905 = vmatpush.bf16.msrb.mxu0 %v2844_v5  ;;  %1566 = vmatpush.bf16.msrb.mxu1 %v2816_v11  ;;  %v2852_v49 = vld [vmem:[%s3954_s3 + $0x220] sm:$0xff] }
 0x141   : > { %v3633_v29 = vmax.f32 %v1003_v18, 0.0  ;;  %v989_v7 = vadd.f32 %v973_v27, %v925_v53  ;;  %1453 = vmatmul.bf16.vlgmr.msra.gmra.mxu0 %v1376_v59  ;;  %1161 = vmatmul.bf16.gmra.mxu1 %v3630_v52  ;;  %v929_v48 = vadd.f32 %v3556_v44, %v871_v19  ;;  %v2073_v53 = vld [vmem:[%s3957_s6] sm:$0x3]  ;;  %v2855_v18 = vld [vmem:[%s3954_s3 + $0x238] sm:$0xff] }
 0x142   : > { %1790 = vmatpush.bf16.msrb.mxu3 %v2837_v57  ;;  %v1048_v36 = vld [vmem:[#allocation2 + $0x50] sm:$0xff]  ;;  %v2111_v59 = vsel %vm408_vm0, %v2073_v53, 0 }
 0x143   : > { %1040 = vst [vmem:[#allocation2 + $0x61] sm:$0xff] %v3633_v29  ;;  %v1001_v42 = vadd.f32 %v3541_v3, %v989_v7  ;;  %v1492_v22 = vpack.c.bf16 %v3633_v29, %v3603_v63  ;;  %v1259_v16 = vld [vmem:[#allocation2 + $0x52] sm:$0xff] }
 0x144   : > { %v981_v60 = vpop.f32.mrf.mxu3  ;;  %1906 = vmatpush.bf16.msrb.mxu0 %v2843_v34  ;;  %2016 = vmatpush.bf16.msra.mxu1 %v2855_v18 }
 0x145   : > { %v3659_v30 = vmax.f32 %v1001_v42, 0.0  ;;  %v992_v56 = vadd.f32 %v981_v60, %v928_v21  ;;  %v2853_v42 = vld [vmem:[%s3954_s3 + $0x228] sm:$0xff] }
 0x146   : > { %v1046_v14 = vld [vmem:[#allocation2 + $0x30] sm:$0xff]  ;;  %1791 = vmatpush.bf16.msrb.mxu3 %v2836_v20 }
 0x147   : > { %v3663_v25 = vld [vmem:[#allocation2 + $0x32] sm:$0xff]  ;;  %1038 = vst [vmem:[#allocation2 + $0x41] sm:$0xff] %v3659_v30  ;;  %v1004_v0 = vadd.f32 %v3541_v3, %v992_v56  ;;  %v3667_v24 = vpack.c.bf16 %v1046_v14, %v1369_v17  ;;  %v3700_v54 = vpack.c.bf16 %v3603_v63, %v3659_v30  ;;  %v2841_v17 = vld [vmem:[%s3954_s3 + $0x1c8] sm:$0xff]  ;;  %v1604_v56 = vpack.c.bf16 %v3661_v51, %v3588_v9 }
 0x148   : > { %v3671_v62 = vpack.c.bf16 %v3663_v25, %v3661_v51  ;;  %1907 = vmatpush.bf16.msrb.mxu0 %v2842_v8  ;;  %2017 = vmatpush.bf16.msra.mxu1 %v2854_v32  ;;  %v1491_v2 = vpack.c.bf16 %v3659_v30, %v3622_v15  ;;  %v2848_v15 = vld [vmem:[%s3954_s3 + $0x200] sm:$0xff] }
 0x149   : > { %v3673_v58 = vmax.f32 %v1004_v0, 0.0  ;;  %1238 = vmatmul.bf16.gmra.mxu2 %v3667_v24  ;;  %v1832_v0 = vld [vmem:[#allocation2 + $0x91] sm:$0xff] }
 0x14a   : > { %1344 = vmatmul.bf16.gmra.mxu3 %v3671_v62  ;;  %v1373_v27 = vld [vmem:[#allocation2 + $0x60] sm:$0xff] }
 0x14b   : > { %1041 = vst [vmem:[#allocation2 + $0x71] sm:$0xff] %v3673_v58  ;;  %1792 = vmatpush.bf16.msrb.mxu3 %v2835_v41  ;;  %v1378_v33 = vpack.c.bf16 %v1373_v27, %v1048_v36  ;;  %v1082_v7 = vpack.c.bf16 %v3673_v58, %v3633_v29  ;;  %v1260_v35 = vld [vmem:[#allocation2 + $0x62] sm:$0xff] }
 0x14c   : > { %v983_v47 = vpop.f32.mrf.mxu3  ;;  %1908 = vmatpush.bf16.msrb.mxu0 %v2841_v17  ;;  %2018 = vmatpush.bf16.msra.mxu1 %v2853_v42  ;;  %v2856_v29 = vld [vmem:[%s3791_s23] sm:$0xff] }
 0x14d   : > { %v993_v6 = vadd.f32 %v983_v47, %v929_v48 }
 0x14e   : > { %v1371_v50 = vld [vmem:[#allocation2 + $0x40] sm:$0xff] }
 0x14f   : > { %v1005_v38 = vadd.f32 %v3541_v3, %v993_v6  ;;  %v1377_v44 = vpack.c.bf16 %v1371_v50, %v1046_v14  ;;  %1793 = vmatpush.bf16.msrb.mxu3 %v2834_v31  ;;  %v2824_v3 = vld [vmem:[%s3954_s3 + $0x140] sm:$0xff]  ;;  %v1053_v4 = vpack.c.bf16 %v1048_v36, %v1371_v50  ;;  %v2849_v14 = vld [vmem:[%s3954_s3 + $0x208] sm:$0xff]  ;;  %v2859_v36 = vld [vmem:[%s3791_s23 + $0x18] sm:$0xff] }
 0x150   : > { %1680 = vmatpush.bf16.msrb.mxu2 %v2824_v3  ;;  %v1258_v1 = vld [vmem:[#allocation2 + $0x42] sm:$0xff]  ;;  %1909 = vmatpush.bf16.msrb.mxu0 %v2840_v43 }
 0x151   : > { %v3705_v39 = vmax.f32 %v1005_v38, 0.0  ;;  %1458 = vmatmul.bf16.gmra.mxu0 %v1377_v44  ;;  %1166 = vmatmul.bf16.gmra.mxu1 %v3700_v54  ;;  %v3726_v46 = vpack.c.bf16 %v1259_v16, %v1258_v1  ;;  %v1605_v9 = vpack.c.bf16 %v1258_v1, %v3663_v25  ;;  %v2858_v38 = vld [vmem:[%s3791_s23 + $0x10] sm:$0xff]  ;;  %s2181_s23 = sshll.u32 %s2178_s21, 4  ;;  %s2182_s23 = int_to_ptr.hbm [resolvable:$true] %s2181_s23 }
 0x152   : > { %v1050_v57 = vld [vmem:[#allocation2 + $0x70] sm:$0xff]  ;;  %2019 = vmatpush.bf16.msra.mxu1 %v2852_v49  ;;  %s2924_s24 = sshra.s32 %s2182_s23, 4  ;;  %s2925_s24 = int_to_ptr.hbm [resolvable:$true] %s2924_s24 }
 0x153   : > { %1042 = vst [vmem:[#allocation2 + $0x81] sm:$0xff] %v3705_v39  ;;  %v1493_v37 = vpack.c.bf16 %v3705_v39, %v3673_v58  ;;  %1794 = vmatpush.bf16.msrb.mxu3 %v2833_v28  ;;  %v1261_v45 = vld [vmem:[#allocation2 + $0x72] sm:$0xff]  ;;  %v1054_v55 = vpack.c.bf16 %v1050_v57, %v1373_v27  ;;  %v1836_v63 = vpack.c.bf16 %v1832_v0, %v3705_v39  ;;  %s2926_s25 = scalar_lea.hbm %s2925_s24, 64  ;;  %p2931_p1 = scmp.lt.s32.totalorder %s2925_s24, %s3959_s8 }
 0x154   : > { %2120 = vmatpush.bf16.msra.mxu2 %v2111_v59  ;;  %v3747_v21 = vpack.c.bf16 %v1261_v45, %v1260_v35  ;;  %v1946_v39 = vld [vmem:[#allocation2 + $0x92] sm:$0xff]  ;;  %p2927_p12 = scmp.ne.s32.totalorder %s2925_s24, %s2926_s25  ;;  %p2932_p2 = scmp.lt.s32.totalorder %s2930_s13, %s2926_s25 }
 0x156   : > { %2020 = vmatpush.bf16.msra.mxu1 %v2851_v12  ;;  %p2928_p13 = pnand %p2927_p12, %p3060_p5  ;;  %p2933_p3 = por %p2932_p2, %p2931_p1 }
 0x157   : > { %1795 = vmatpush.bf16.msrb.mxu3 %v2832_v40 }
 0x158   : > { %p2929_p0 = pneg %p2928_p13 }
 0x159   : > { %1243 = vmatmul.bf16.gmra.mxu2 %v1053_v4 }
 0x15a   : > { %1349 = vmatmul.bf16.gmra.mxu3 %v3726_v46  ;;  %v1375_v60 = vld [vmem:[#allocation2 + $0x80] sm:$0xff]  ;;  %2021 = vmatpush.bf16.msra.mxu1 %v2850_v61  ;;  %p2934_p4 = pnand %p2933_p3, %p2929_p0 }
 0x15b   : > { %v1379_v20 = vpack.c.bf16 %v1375_v60, %v1050_v57  ;;  %v1603_v30 = vld [vmem:[#allocation2 + $0x82] sm:$0xff]  ;;  %v1722_v25 = vpack.c.bf16 0.0, %v1375_v60 }
 0x15c   : > { %v1607_v51 = vpack.c.bf16 %v1603_v30, %v1261_v45 }
 0x15e   : > { %2022 = vmatpush.bf16.msra.mxu1 %v2849_v14 }
 0x161   : > { %1463 = vmatmul.bf16.gmra.mxu0 %v1378_v33  ;;  %1171 = vmatmul.bf16.gmra.mxu1 %v1082_v7 }
 0x162   : > { %2023 = vmatpush.bf16.msra.mxu1 %v2848_v15 }
 0x169   : > { %1248 = vmatmul.bf16.gmra.mxu2 %v1054_v55 }
 0x16a   : > { %1354 = vmatmul.bf16.gmra.mxu3 %v3747_v21 }
 0x171   : > { %1468 = vmatmul.bf16.gmra.mxu0 %v1379_v20  ;;  %1567 = vmatmul.bf16.vlgmr.msrb.gmra.mxu1 %v1490_v10 }
 0x179   : > { %1681 = vmatmul.bf16.vlgmr.msrb.gmra.mxu2 %v1604_v56 }
 0x17a   : > { %1796 = vmatmul.bf16.vlgmr.msrb.gmra.mxu3 %v3667_v24 }
 0x181   : > { %1910 = vmatmul.bf16.vlgmr.msrb.gmra.mxu0 %v3630_v52  ;;  %1572 = vmatmul.bf16.gmra.mxu1 %v1491_v2  ;;  %v1606_v52 = vpack.c.bf16 %v1260_v35, %v1259_v16 }
 0x189   : > { %1686 = vmatmul.bf16.gmra.mxu2 %v1605_v9 }
 0x18a   : > { %1801 = vmatmul.bf16.gmra.mxu3 %v1053_v4 }
 0x191   : > { %1915 = vmatmul.bf16.gmra.mxu0 %v3700_v54  ;;  %1577 = vmatmul.bf16.gmra.mxu1 %v1492_v22 }
 0x199   : > { %1691 = vmatmul.bf16.gmra.mxu2 %v1606_v52 }
 0x19a   : > { %1806 = vmatmul.bf16.gmra.mxu3 %v1054_v55 }
 0x1a1   : > { %1920 = vmatmul.bf16.gmra.mxu0 %v1082_v7  ;;  %1582 = vmatmul.bf16.gmra.mxu1 %v1493_v37  ;;  %v1950_v37 = vpack.c.bf16 %v1946_v39, %v1603_v30  ;;  %v3859_v39 = vld [vmem:[%s3955_s4] ss:$0 sm:$0xff] }
 0x1a9   : > { %1696 = vmatmul.bf16.gmra.mxu2 %v1607_v51 }
 0x1aa   : > { %1811 = vmatmul.bf16.gmra.mxu3 %v1722_v25 }
 0x1ae   : > { %v1157_v24 = vpop.f32.mrf.mxu1 }
 0x1b1   : > { %1925 = vmatmul.bf16.gmra.mxu0 %v1836_v63  ;;  %2024 = vmatmul.bf16.vlgmr.msra.gmra.mxu1 %v3671_v62 }
 0x1b6   : > { %v1159_v22 = vpop.f32.mrf.mxu1 }
 0x1b9   : > { %2774 = vmatmul.msk.bf16.vlgmr.msra.gmra.mxu2 %vm395_vm1, %v2856_v29 }
 0x1bc   : > { %v1234_v19 = vpop.f32.mrf.mxu2 }
 0x1bd   : > { %v3795_v58 = vadd.f32 %v1234_v19, %v1157_v24  ;;  %v1340_v5 = vpop.f32.mrf.mxu3 }
 0x1be   : > { %v1162_v23 = vpop.f32.mrf.mxu1  ;;  %v1454_v54 = vpop.f32.mrf.mxu0 }
 0x1bf   : > { %v1360_v25 = vadd.f32 %v1340_v5, %v3795_v58 }
 0x1c1   : > { %2029 = vmatmul.bf16.gmra.mxu1 %v3726_v46  ;;  %v1474_v24 = vadd.f32 %v1454_v54, %v1360_v25 }
 0x1c4   : > { %v1236_v41 = vpop.f32.mrf.mxu2 }
 0x1c5   : > { %v3798_v62 = vadd.f32 %v1236_v41, %v1159_v22  ;;  %v1342_v28 = vpop.f32.mrf.mxu3 }
 0x1c6   : > { %v1164_v26 = vpop.f32.mrf.mxu1  ;;  %v1456_v1 = vpop.f32.mrf.mxu0 }
 0x1c9   : > { %2775 = vmatmul.msk.bf16.gmra.mxu2 %vm395_vm1, %v2857_v13 }
 0x1cc   : > { %v1239_v48 = vpop.f32.mrf.mxu2 }
 0x1cd   : > { %v3802_v47 = vadd.f32 %v1239_v48, %v1162_v23  ;;  %v1345_v4 = vpop.f32.mrf.mxu3  ;;  %v1361_v23 = vadd.f32 %v1342_v28, %v3798_v62  ;;  %v3864_v62 = vld [vmem:[%s3958_s7] ss:$0 sm:$0xff] }
 0x1ce   : > { %v1167_v31 = vpop.f32.mrf.mxu1  ;;  %v1459_v46 = vpop.f32.mrf.mxu0 }
 0x1cf   : > { %v1362_v58 = vadd.f32 %v1345_v4, %v3802_v47 }
 0x1d1   : > { %2034 = vmatmul.bf16.gmra.mxu1 %v3747_v21  ;;  %v1476_v28 = vadd.f32 %v1459_v46, %v1362_v58 }
 0x1d4   : > { %v1241_v6 = vpop.f32.mrf.mxu2 }
 0x1d5   : > { %v3805_v50 = vadd.f32 %v1241_v6, %v1164_v26  ;;  %v1347_v59 = vpop.f32.mrf.mxu3  ;;  %v1475_v26 = vadd.f32 %v1456_v1, %v1361_v23 }
 0x1d6   : > { %v1169_v44 = vpop.f32.mrf.mxu1  ;;  %v3817_v43 = vpop.f32.mrf.mxu0 }
 0x1d7   : > { %v1363_v4 = vadd.f32 %v1347_v59, %v3805_v50 }
 0x1d9   : > { %2776 = vmatmul.msk.bf16.gmra.mxu2 %vm395_vm1, %v2858_v38  ;;  %v1477_v46 = vadd.f32 %v3817_v43, %v1363_v4 }
 0x1dc   : > { %v1244_v11 = vpop.f32.mrf.mxu2 }
 0x1dd   : > { %v3809_v3 = vadd.f32 %v1244_v11, %v1167_v31  ;;  %v3821_v32 = vpop.f32.mrf.mxu3 }
 0x1de   : > { %v1172_v34 = vpop.f32.mrf.mxu1  ;;  %v3823_v35 = vpop.f32.mrf.mxu0 }
 0x1e1   : > { %2039 = vmatmul.bf16.gmra.mxu1 %v1950_v37 }
 0x1e4   : > { %v1246_v40 = vpop.f32.mrf.mxu2 }
 0x1e5   : > { %v3811_v8 = vadd.f32 %v1246_v40, %v1169_v44  ;;  %v3825_v21 = vpop.f32.mrf.mxu3 }
 0x1e6   : > { %v1174_v16 = vpop.f32.mrf.mxu1  ;;  %v3827_v60 = vpop.f32.mrf.mxu0 }
 0x1e9   : > { %2777 = vmatmul.msk.bf16.gmra.mxu2 %vm395_vm1, %v2859_v36 }
 0x1ec   : > { %v1249_v53 = vpop.f32.mrf.mxu2 }
 0x1ed   : > { %v3815_v17 = vadd.f32 %v1249_v53, %v1172_v34  ;;  %v3831_v49 = vpop.f32.mrf.mxu3 }
 0x1ee   : > { %v1568_v18 = vpop.f32.mrf.mxu1  ;;  %v3833_v56 = vpop.f32.mrf.mxu0 }
 0x1ef   : > { %v1588_v29 = vadd.f32 %v1568_v18, %v1474_v24 }
 0x1f4   : > { %v1251_v27 = vpop.f32.mrf.mxu2 }
 0x1f5   : > { %v3819_v33 = vadd.f32 %v1251_v27, %v1174_v16  ;;  %v3837_v61 = vpop.f32.mrf.mxu3 }
 0x1f6   : > { %v1570_v7 = vpop.f32.mrf.mxu1  ;;  %v3841_v14 = vpop.f32.mrf.mxu0 }
 0x1f7   : > { %v1589_v6 = vadd.f32 %v1570_v7, %v1475_v26 }
 0x1fc   : > { %v1682_v57 = vpop.f32.mrf.mxu2 }
 0x1fd   : > { %v1797_v52 = vpop.f32.mrf.mxu3  ;;  %v1702_v41 = vadd.f32 %v1682_v57, %v1588_v29 }
 0x1fe   : > { %v1573_v45 = vpop.f32.mrf.mxu1  ;;  %v1911_v0 = vpop.f32.mrf.mxu0 }
 0x1ff   : > { %v1817_v48 = vadd.f32 %v1797_v52, %v1702_v41  ;;  %v1590_v47 = vadd.f32 %v1573_v45, %v1476_v28 }
 0x201   : > { %v1931_v5 = vadd.f32 %v1911_v0, %v1817_v48 }
 0x204   : > { %v1684_v55 = vpop.f32.mrf.mxu2 }
 0x205   : > { %v1799_v22 = vpop.f32.mrf.mxu3  ;;  %v1703_v44 = vadd.f32 %v1684_v55, %v1589_v6 }
 0x206   : > { %v1575_v42 = vpop.f32.mrf.mxu1  ;;  %v1913_v13 = vpop.f32.mrf.mxu0 }
 0x207   : > { %v1818_v34 = vadd.f32 %v1799_v22, %v1703_v44  ;;  %v1591_v25 = vadd.f32 %v1575_v42, %v1477_v46 }
 0x209   : > { %v1932_v53 = vadd.f32 %v1913_v13, %v1818_v34 }
 0x20c   : > { %v1687_v20 = vpop.f32.mrf.mxu2 }
 0x20d   : > { %v1802_v54 = vpop.f32.mrf.mxu3  ;;  %v1704_v18 = vadd.f32 %v1687_v20, %v1590_v47  ;;  %v1364_v20 = vadd.f32 %v3821_v32, %v3809_v3  ;;  %v1365_v3 = vadd.f32 %v3825_v21, %v3811_v8 }
 0x20e   : > { %v3829_v10 = vpop.f32.mrf.mxu1  ;;  %v1916_v37 = vpop.f32.mrf.mxu0 }
 0x20f   : > { %v1819_v52 = vadd.f32 %v1802_v54, %v1704_v18  ;;  %v1478_v41 = vadd.f32 %v3823_v35, %v1364_v20 }
 0x211   : > { %v1933_v29 = vadd.f32 %v1916_v37, %v1819_v52  ;;  %v1592_v48 = vadd.f32 %v3829_v10, %v1478_v41 }
 0x214   : > { %v1689_v12 = vpop.f32.mrf.mxu2 }
 0x215   : > { %v1804_v55 = vpop.f32.mrf.mxu3  ;;  %v1705_v22 = vadd.f32 %v1689_v12, %v1591_v25 }
 0x216   : > { %v3835_v2 = vpop.f32.mrf.mxu1  ;;  %v1918_v0 = vpop.f32.mrf.mxu0 }
 0x217   : > { %v1820_v13 = vadd.f32 %v1804_v55, %v1705_v22 }
 0x219   : > { %v1934_v32 = vadd.f32 %v1918_v0, %v1820_v13 }
 0x21c   : > { %v3839_v9 = vpop.f32.mrf.mxu2 }
 0x21d   : > { %v1807_v42 = vpop.f32.mrf.mxu3  ;;  %v1706_v12 = vadd.f32 %v3839_v9, %v1592_v48  ;;  %v1366_v9 = vadd.f32 %v3831_v49, %v3815_v17  ;;  %v1367_v49 = vadd.f32 %v3837_v61, %v3819_v33 }
 0x21e   : > { %v3843_v15 = vpop.f32.mrf.mxu1  ;;  %v1921_v58 = vpop.f32.mrf.mxu0 }
 0x21f   : > { %v1821_v28 = vadd.f32 %v1807_v42, %v1706_v12 }
 0x224   : > { %v3845_v30 = vpop.f32.mrf.mxu2 }
 0x225   : > { %v1809_v21 = vpop.f32.mrf.mxu3 }
 0x226   : > { %v3847_v51 = vpop.f32.mrf.mxu1 }
 0x22c   : > { %v3850_v63 = vpop.f32.mrf.mxu2 }
 0x22d   : > { %v1812_v46 = vpop.f32.mrf.mxu3 }
 0x22e   : > { %v2025_v19 = vpop.f32.mrf.mxu1 }
 0x22f   : > { %v2045_v11 = vadd.f32 %v2025_v19, %v1931_v5 }
 0x231   : > { %v2057_v40 = vadd.f32 %v3859_v39, %v2045_v11  ;;  %v1479_v11 = vadd.f32 %v3827_v60, %v1365_v3 }
 0x233   : > { %v1593_v34 = vadd.f32 %v3835_v2, %v1479_v11 }
 0x234   : > { %v3853_v31 = vpop.f32.mrf.mxu2 }
 0x235   : > { %v1707_v47 = vadd.f32 %v3845_v30, %v1593_v34  ;;  %v1814_v22 = vpop.f32.mrf.mxu3 }
 0x236   : > { %v2027_v38 = vpop.f32.mrf.mxu1 }
 0x237   : > { %v2046_v57 = vadd.f32 %v2027_v38, %v1932_v53  ;;  %v1480_v53 = vadd.f32 %v3833_v56, %v1366_v9  ;;  %v1822_v18 = vadd.f32 %v1809_v21, %v1707_v47 }
 0x239   : > { %v2058_v24 = vadd.f32 %v3859_v39, %v2046_v57 }
 0x23c   : > { %v2122_v1 = vpop.f32.mrf.mxu2 }
 0x23d   : > { %v2123_v36 = vadd.f32 %v3864_v62, %v2122_v1  ;;  %v1935_v1 = vadd.f32 %v1921_v58, %v1821_v28 }
 0x23e   : > { %v2030_v16 = vpop.f32.mrf.mxu1 }
 0x23f   : > { %v2142_v27 = vadd.f32 %v2123_v36, %v2057_v40  ;;  %v2047_v23 = vadd.f32 %v2030_v16, %v1933_v29  ;;  %v1923_v36 = vpop.f32.mrf.mxu0 }
 0x240   : > { %v1936_v30 = vadd.f32 %v1923_v36, %v1822_v18 }
 0x241   : > { %v2150_v7 = vmax.f32 %v2142_v27, 0.0  ;;  %v2059_v6 = vadd.f32 %v3859_v39, %v2047_v23  ;;  %v1594_v27 = vadd.f32 %v3843_v15, %v1480_v53 }
 0x243   : > { %2158 = vst [vmem:[%s3873_s17] sm:$0xff] %v2150_v7  ;;  %v1708_v57 = vadd.f32 %v3850_v63, %v1594_v27 }
 0x244   : > { %v2124_v45 = vpop.f32.mrf.mxu2 }
 0x245   : > { %v2125_v50 = vadd.f32 %v3864_v62, %v2124_v45  ;;  %v1481_v45 = vadd.f32 %v3841_v14, %v1367_v49  ;;  %v1823_v25 = vadd.f32 %v1812_v46, %v1708_v57 }
 0x246   : > { %v2032_v59 = vpop.f32.mrf.mxu1 }
 0x247   : > { %v2143_v43 = vadd.f32 %v2125_v50, %v2058_v24  ;;  %v2048_v54 = vadd.f32 %v2032_v59, %v1934_v32  ;;  %v1926_v0 = vpop.f32.mrf.mxu0  ;;  %v1595_v50 = vadd.f32 %v3847_v51, %v1481_v45 }
 0x248   : > { %v1937_v61 = vadd.f32 %v1926_v0, %v1823_v25 }
 0x249   : > { %v2151_v19 = vmax.f32 %v2143_v43, 0.0  ;;  %v2060_v37 = vadd.f32 %v3859_v39, %v2048_v54  ;;  %v1709_v63 = vadd.f32 %v3853_v31, %v1595_v50 }
 0x24b   : > { %2159 = vst [vmem:[%s3873_s17 + $0x8] sm:$0xff] %v2151_v19  ;;  %v1824_v43 = vadd.f32 %v1814_v22, %v1709_v63 }
 0x24c   : > { %v2127_v26 = vpop.f32.mrf.mxu2 }
 0x24d   : > { %v2128_v38 = vadd.f32 %v3864_v62, %v2127_v26 }
 0x24e   : > { %v2035_v35 = vpop.f32.mrf.mxu1 }
 0x24f   : > { %v2144_v5 = vadd.f32 %v2128_v38, %v2059_v6  ;;  %v2049_v16 = vadd.f32 %v2035_v35, %v1935_v1  ;;  %v1928_v41 = vpop.f32.mrf.mxu0 }
 0x250   : > { %v1938_v42 = vadd.f32 %v1928_v41, %v1824_v43 }
 0x251   : > { %v2152_v44 = vmax.f32 %v2144_v5, 0.0  ;;  %v2061_v7 = vadd.f32 %v3859_v39, %v2049_v16 }
 0x253   : > { %2160 = vst [vmem:[%s3873_s17 + $0x10] sm:$0xff] %v2152_v44 }
 0x254   : > { %v2129_v10 = vpop.f32.mrf.mxu2 }
 0x255   : > { %v2130_v8 = vadd.f32 %v3864_v62, %v2129_v10 }
 0x256   : > { %v2037_v4 = vpop.f32.mrf.mxu1 }
 0x257   : > { %v2145_v40 = vadd.f32 %v2130_v8, %v2060_v37  ;;  %v2050_v56 = vadd.f32 %v2037_v4, %v1936_v30 }
 0x259   : > { %v2153_v60 = vmax.f32 %v2145_v40, 0.0  ;;  %v2062_v59 = vadd.f32 %v3859_v39, %v2050_v56 }
 0x25b   : > { %2161 = vst [vmem:[%s3873_s17 + $0x18] sm:$0xff] %v2153_v60 }
 0x25c   : > { %v2132_v2 = vpop.f32.mrf.mxu2 }
 0x25d   : > { %v2133_v17 = vadd.f32 %v3864_v62, %v2132_v2 }
 0x25e   : > { %v2040_v24 = vpop.f32.mrf.mxu1 }
 0x25f   : > { %v2146_v55 = vadd.f32 %v2133_v17, %v2061_v7  ;;  %v2051_v14 = vadd.f32 %v2040_v24, %v1937_v61 }
 0x261   : > { %v2154_v52 = vmax.f32 %v2146_v55, 0.0  ;;  %v2063_v23 = vadd.f32 %v3859_v39, %v2051_v14 }
 0x263   : > { %2162 = vst [vmem:[%s3873_s17 + $0x20] sm:$0xff] %v2154_v52 }
 0x264   : > { %v2134_v15 = vpop.f32.mrf.mxu2 }
 0x265   : > { %v2135_v33 = vadd.f32 %v3864_v62, %v2134_v15 }
 0x266   : > { %v2042_v13 = vpop.f32.mrf.mxu1 }
 0x267   : > { %v2147_v20 = vadd.f32 %v2135_v33, %v2062_v59  ;;  %v2052_v48 = vadd.f32 %v2042_v13, %v1938_v42 }
 0x269   : > { %v2155_v29 = vmax.f32 %v2147_v20, 0.0  ;;  %v2064_v38 = vadd.f32 %v3859_v39, %v2052_v48 }
 0x26b   : > { %2163 = vst [vmem:[%s3873_s17 + $0x28] sm:$0xff] %v2155_v29 }
 0x26c   : > { %v2137_v19 = vpop.f32.mrf.mxu2 }
 0x26d   : > { %v2138_v51 = vadd.f32 %v3864_v62, %v2137_v19 }
 0x26f   : > { %v2148_v26 = vadd.f32 %v2138_v51, %v2063_v23 }
 0x271   : > { %v2156_v31 = vmax.f32 %v2148_v26, 0.0 }
 0x273   : > { %2164 = vst [vmem:[%s3873_s17 + $0x30] sm:$0xff] %v2156_v31 }
 0x274   : > { %v2139_v6 = vpop.f32.mrf.mxu2 }
 0x275   : > { %v2140_v3 = vadd.f32 %v3864_v62, %v2139_v6 }
 0x277   : > { %v2149_v32 = vadd.f32 %v2140_v3, %v2064_v38 }
 0x279   : > { %v2157_v12 = vmax.f32 %v2149_v32, 0.0 }
 0x27b   : > { %2165 = vst [vmem:[%s3873_s17 + $0x38] sm:$0xff] %v2157_v12 }
 0x27c   : > { %2937 = shalt.err (!%p2934_p4)
}
 0x27d   : > { %s2975_s12 = smov 128   ;;  %s2976_s17 = smov 8  }
 0x27e   : > { %2865 = dma.vmem_to_hbm [thread:$0]  (%p3060_p5), %s2180_s22, 1024, %s2182_s23, %s2167_s9, %s2975_s12, %s2975_s12, %s2976_s17  }
 0x27f PF: > { %p2871_p7 = scmp.ge.s32.totalorder %s2972_s30, 2  ;;  %s2196_s20 = sand.u32 1, %s2960_s27  }
 0x280   : > { %s2197_s21 = scalar_lea.sflag [#allocation4], %s2196_s20 }
 0x281   : > { %p2868_p8 = pnand %p2871_p7, %p3064_p6 }
 0x283   : > { %p2869_p9 = pneg %p2868_p8 }
 0x285   : > { %2955 = dma.done.wait (%p2869_p9), %s2197_s21, 1024  }
 0x286   : > { %2957 = vsyncadd (%p2869_p9), %s2197_s21, 4294966272  ;;  %p18_p10 = scmp.ge.s32.totalorder %s3047_s11, 4   ;;  %s3962_s27 = smov %s2964_s28 }
 0x287   : > { %s3963_s28 = smov %s2968_s29  ;;  %s3964_s29 = smov %s3058_s14 }
 0x288   : > { %s3965_s30 = smov %s3047_s11  ;;  %20 = sbr.rel (!%p18_p10) target bundleno = 3 (0x3), region = 111 }
 0x28d   :  { %2203 = vsyncpa [#allocation4], 1 }
 0x28e   :  { %2205 = vsyncpa [#allocation4 + $0x1], 1 }

</bundles_post_ra>
